<compile_context>
chip_gen: v7x
topology: tpu7x:2x2x1
jax: 0.10.0
libtpu: 0.0.40
codegen_flags: <defaults>
</compile_context>

<pallas_src>
import functools

import jax
import jax.numpy as jnp
from jax.experimental import pallas as pl
from jax.experimental.pallas import tpu as pltpu

# Padded channel widths (multiples of 128 -> lane-dense stores); logical widths in comments.
C_IN = 3           # RGB input
C1 = 128           # stem channels          (logical 32, zero-padded)
C2 = 128           # MBConv expanded chans  (logical 96, zero-padded)
C_SE = 128         # SE bottleneck          (logical 8,  zero-padded)
C_HEAD = 128       # head channels          (exactly 128)
N_FEAT = 1000      # EfficientNet classifier width (folded away at inference)
NUM_CLASSES = 1

# Row tile for matmul-style kernels: 2*(tm*K + tm*N)*2B + K*N*2B << 32 MiB scoped VMEM on v5e/v6e/v7x.
_MATMUL_TM = 256


# ----------------------------------------------------------------------------
# Kernel 1: row-tiled fused matmul + bias + activation  (stem / expand / SE / classifier)
# ----------------------------------------------------------------------------
def _matmul_bias_act_kernel(x_ref, w_ref, b_ref, o_ref, *, act):
    acc = jnp.dot(x_ref[...], w_ref[...], preferred_element_type=jnp.float32)
    acc = acc + b_ref[...]
    if act == "silu":
        acc = acc * jax.nn.sigmoid(acc)
    elif act == "sigmoid":
        acc = jax.nn.sigmoid(acc)
    o_ref[...] = acc.astype(o_ref.dtype)


def matmul_bias_act(x, w, b, act="none", out_dtype=None):
    M, K = x.shape
    _, Nc = w.shape
    out_dtype = out_dtype if out_dtype is not None else x.dtype
    # Full-M block when small (always a legal full-dim block); otherwise fixed 256-row tiles with a
    # Pallas-masked tail block -> bounded VMEM, pipelined DMA on every chip generation.
    tm = M if M <= _MATMUL_TM else _MATMUL_TM
    return pl.pallas_call(
        functools.partial(_matmul_bias_act_kernel, act=act),
        out_shape=jax.ShapeDtypeStruct((M, Nc), out_dtype),
        grid=(pl.cdiv(M, tm),),
        in_specs=[
            pl.BlockSpec((tm, K), lambda i: (i, 0)),
            pl.BlockSpec((K, Nc), lambda i: (0, 0)),   # weights stay resident across row tiles
            pl.BlockSpec((1, Nc), lambda i: (0, 0)),
        ],
        out_specs=pl.BlockSpec((tm, Nc), lambda i: (i, 0)),
        compiler_params=pltpu.CompilerParams(dimension_semantics=("parallel",)),
    )(x, w, b)


# ----------------------------------------------------------------------------
# Kernel 2: depthwise 3x3 (SAME) + SiLU, fused with the SE global-average-pool
# ----------------------------------------------------------------------------
def _dw3x3_silu_pool_kernel(x_ref, w_ref, b_ref, o_ref, pool_ref, xp_ref):
    _, H, W, C = x_ref.shape
    # SAME padding done on-chip in VMEM scratch (no wrapper jnp.pad -> no extra HBM pass).
    xp_ref[...] = jnp.zeros_like(xp_ref)
    xp_ref[pl.ds(1, H), pl.ds(1, W), :] = x_ref[0].astype(xp_ref.dtype)
    acc = jnp.zeros((H, W, C), jnp.float32)
    for k in range(9):
        dy, dx = divmod(k, 3)
        acc = acc + xp_ref[pl.ds(dy, H), pl.ds(dx, W), :] * w_ref[k, :]
    acc = acc + b_ref[0, :]
    acc = acc * jax.nn.sigmoid(acc)                                        # SiLU in f32
    o_ref[...] = acc[None].astype(o_ref.dtype)
    # Fused SE squeeze (global average pool over H, W).
    pool_ref[...] = (jnp.sum(acc, axis=(0, 1)) * (1.0 / (H * W)))[None, None, :].astype(pool_ref.dtype)


def depthwise3x3_silu_pool(x, w, b):
    N, H, W, C = x.shape
    # TODO(synk): at real EfficientNet resolutions also tile over H rows (with halo) to bound the
    #             per-step VMEM footprint on v7x (64 MiB); per-image blocks are ample at these sizes.
    return pl.pallas_call(
        _dw3x3_silu_pool_kernel,
        out_shape=(jax.ShapeDtypeStruct((N, H, W, C), x.dtype),
                   jax.ShapeDtypeStruct((N, 1, C), jnp.float32)),
        grid=(N,),
        in_specs=[
            pl.BlockSpec((1, H, W, C), lambda n: (n, 0, 0, 0)),
            pl.BlockSpec((9, C), lambda n: (0, 0)),
            pl.BlockSpec((1, C), lambda n: (0, 0)),
        ],
        out_specs=(pl.BlockSpec((1, H, W, C), lambda n: (n, 0, 0, 0)),
                   pl.BlockSpec((1, 1, C), lambda n: (n, 0, 0))),
        scratch_shapes=[pltpu.VMEM((H + 2, W + 2, C), jnp.float32)],
        compiler_params=pltpu.CompilerParams(dimension_semantics=("parallel",)),
    )(x, w, b)


# ----------------------------------------------------------------------------
# Kernel 3: fused SE channel-scale -> 1x1 projection -> residual add
# ----------------------------------------------------------------------------
def _se_proj_res_kernel(d_ref, s_ref, w_ref, b_ref, h_ref, o_ref):
    xs = (d_ref[0].astype(jnp.float32) * s_ref[0]).astype(w_ref.dtype)     # SE scale, bf16 for MXU
    acc = jnp.dot(xs, w_ref[...], preferred_element_type=jnp.float32)
    acc = acc + b_ref[...] + h_ref[0].astype(jnp.float32)                  # bias + residual
    o_ref[...] = acc[None].astype(o_ref.dtype)


def se_proj_residual(d, s, w, b, h, thw_max=256):
    N, HW, Cexp = d.shape
    Cout = w.shape[1]
    thw = HW if HW <= thw_max else thw_max
    return pl.pallas_call(
        _se_proj_res_kernel,
        out_shape=jax.ShapeDtypeStruct((N, HW, Cout), d.dtype),
        grid=(N, pl.cdiv(HW, thw)),
        in_specs=[
            pl.BlockSpec((1, thw, Cexp), lambda n, j: (n, j, 0)),
            pl.BlockSpec((1, 1, Cexp), lambda n, j: (n, 0, 0)),
            pl.BlockSpec((Cexp, Cout), lambda n, j: (0, 0)),
            pl.BlockSpec((1, Cout), lambda n, j: (0, 0)),
            pl.BlockSpec((1, thw, Cout), lambda n, j: (n, j, 0)),
        ],
        out_specs=pl.BlockSpec((1, thw, Cout), lambda n, j: (n, j, 0)),
        compiler_params=pltpu.CompilerParams(dimension_semantics=("parallel", "parallel")),
    )(d, s, w, b, h)


# ----------------------------------------------------------------------------
# Kernel 4: fused head 1x1 conv + SiLU + global-average-pool (accumulated over spatial tiles)
# ----------------------------------------------------------------------------
def _head_gap_kernel(x_ref, w_ref, b_ref, o_ref, acc_ref, *, hw_total, thw):
    j = pl.program_id(1)

    @pl.when(j == 0)
    def _init():
        acc_ref[...] = jnp.zeros_like(acc_ref)

    h = jnp.dot(x_ref[0], w_ref[...], preferred_element_type=jnp.float32) + b_ref[...]
    h = h * jax.nn.sigmoid(h)
    # Mask rows of a (possibly partial) tail tile so they do not pollute the pooled sum.
    rows_left = hw_total - j * thw
    row_ids = jax.lax.broadcasted_iota(jnp.int32, (thw, 1), 0)
    h = jnp.where(row_ids < rows_left, h, 0.0)
    acc_ref[...] += jnp.sum(h, axis=0, keepdims=True)

    @pl.when(j == pl.num_programs(1) - 1)
    def _finalize():
        o_ref[...] = (acc_ref[...] * (1.0 / hw_total))[None].astype(o_ref.dtype)


def head_conv_gap(x, w, b, thw_max=256):
    N, HW, Cin = x.shape
    Cout = w.shape[1]
    thw = HW if HW <= thw_max else thw_max
    return pl.pallas_call(
        functools.partial(_head_gap_kernel, hw_total=HW, thw=thw),
        out_shape=jax.ShapeDtypeStruct((N, 1, Cout), jnp.float32),
        grid=(N, pl.cdiv(HW, thw)),
        in_specs=[
            pl.BlockSpec((1, thw, Cin), lambda n, j: (n, j, 0)),
            pl.BlockSpec((Cin, Cout), lambda n, j: (0, 0)),
            pl.BlockSpec((1, Cout), lambda n, j: (0, 0)),
        ],
        out_specs=pl.BlockSpec((1, 1, Cout), lambda n, j: (n, 0, 0)),
        scratch_shapes=[pltpu.VMEM((1, Cout), jnp.float32)],
        compiler_params=pltpu.CompilerParams(dimension_semantics=("parallel", "arbitrary")),
    )(x, w, b)


# ----------------------------------------------------------------------------
# Glue: im2col for the 3x3/stride-2 stem conv (pad=1) on the tiny 3-channel input.
# TODO(synk): at production resolutions move this patch extraction inside the stem kernel
#             (strided pl.ds reads) to keep the 9x duplication on-chip.
# ----------------------------------------------------------------------------
def _im2col_3x3_s2(x):
    N, H, W, C = x.shape
    pad, k, stride = 1, 3, 2
    Ho = (H + 2 * pad - k) // stride + 1
    Wo = (W + 2 * pad - k) // stride + 1
    xp = jnp.pad(x, ((0, 0), (pad, pad), (pad, pad), (0, 0)))
    cols = []
    for dy in range(k):
        for dx in range(k):
            cols.append(xp[:, dy:dy + stride * Ho:stride, dx:dx + stride * Wo:stride, :])
    patches = jnp.stack(cols, axis=-2)                   # (N, Ho, Wo, 9, C)
    return patches.reshape(N * Ho * Wo, k * k * C), (Ho, Wo)


# ----------------------------------------------------------------------------
# Parameters (deterministic synthetic init; BN folded; channels zero-padded to 128 lanes)
# ----------------------------------------------------------------------------
def _padded_dense(key, fan_in, shape, padded_shape, dtype=jnp.bfloat16):
    w = jax.random.normal(key, shape, jnp.float32) / jnp.sqrt(jnp.float32(fan_in))
    w = jnp.pad(w, [(0, p - s) for s, p in zip(shape, padded_shape)])
    return w.astype(dtype)


def init_params(key):
    ks = jax.random.split(key, 10)
    p = {
        # stem 3x3/s2 conv (im2col weights: 27 = 3*3*RGB -> logical 32 channels)
        "stem_w": _padded_dense(ks[0], 27, (27, 32), (27, C1)),
        "stem_b": jnp.zeros((1, C1), jnp.float32),
        # MBConv expand 1x1 (32 -> 96)
        "exp_w": _padded_dense(ks[1], 32, (32, 96), (C1, C2)),
        "exp_b": jnp.zeros((1, C2), jnp.float32),
        # depthwise 3x3 (per-channel)
        "dw_w": _padded_dense(ks[2], 9, (9, 96), (9, C2), dtype=jnp.float32),
        "dw_b": jnp.zeros((1, C2), jnp.float32),
        # squeeze-excite (96 -> 8 -> 96)
        "se1_w": _padded_dense(ks[3], 96, (96, 8), (C2, C_SE)),
        "se1_b": jnp.zeros((1, C_SE), jnp.float32),
        "se2_w": _padded_dense(ks[4], 8, (8, 96), (C_SE, C2)),
        "se2_b": jnp.zeros((1, C2), jnp.float32),
        # MBConv project 1x1 (96 -> 32)
        "proj_w": _padded_dense(ks[5], 96, (96, 32), (C2, C1)),
        "proj_b": jnp.zeros((1, C1), jnp.float32),
        # head 1x1 (32 -> 128)
        "head_w": _padded_dense(ks[6], 32, (32, 128), (C1, C_HEAD)),
        "head_b": jnp.zeros((1, C_HEAD), jnp.float32),
    }
    # EfficientNet 1000-way classifier and Effinet.fc_layer (Dropout(0.2) -> Linear(1000, num_classes)).
    cls_w = _padded_dense(ks[7], C_HEAD, (C_HEAD, N_FEAT), (C_HEAD, N_FEAT), dtype=jnp.float32)
    cls_b = jnp.zeros((N_FEAT,), jnp.float32)
    fc_w = _padded_dense(ks[8], N_FEAT, (N_FEAT, NUM_CLASSES), (N_FEAT, NUM_CLASSES), dtype=jnp.float32)
    fc_b = jnp.zeros((NUM_CLASSES,), jnp.float32)
    # Dropout is identity at inference -> fold the two Linears into one 128 x num_classes matmul
    # (no (N, 1000) intermediate in HBM, no degenerate masked 1000-lane store).
    p["clsfc_w"] = cls_w @ fc_w                               # (C_HEAD, NUM_CLASSES)
    p["clsfc_b"] = (cls_b @ fc_w + fc_b).reshape(1, NUM_CLASSES)
    return p


# ----------------------------------------------------------------------------
# Forward pass (mirrors Effinet.forward: features = backbone(x); out = fc_layer(features))
# ----------------------------------------------------------------------------
def effinet_forward(params, x_nchw):
    x = jnp.transpose(x_nchw, (0, 2, 3, 1))                   # NCHW -> NHWC (C on the 128-lane axis)
    N = x.shape[0]

    # --- EfficientNet-style backbone (simplified; see TODO at top) ---
    patches, (Ho, Wo) = _im2col_3x3_s2(x)                     # stem conv 3x3/s2 via im2col
    HW = Ho * Wo
    h1 = matmul_bias_act(patches.astype(jnp.bfloat16), params["stem_w"], params["stem_b"],
                         act="silu", out_dtype=jnp.bfloat16)                     # (N*HW, C1)

    # MBConv: expand 1x1 -> depthwise 3x3 (+fused SE pool) -> SE -> fused scale/project/residual
    e = matmul_bias_act(h1, params["exp_w"], params["exp_b"],
                        act="silu", out_dtype=jnp.bfloat16)                      # (N*HW, C2)
    d, s_pool = depthwise3x3_silu_pool(e.reshape(N, Ho, Wo, C2),
                                       params["dw_w"], params["dw_b"])
    s = matmul_bias_act(s_pool.reshape(N, C2).astype(jnp.bfloat16),
                        params["se1_w"], params["se1_b"], act="silu", out_dtype=jnp.bfloat16)
    s = matmul_bias_act(s, params["se2_w"], params["se2_b"],
                        act="sigmoid", out_dtype=jnp.float32)                    # (N, C2) SE gates
    pr = se_proj_residual(d.reshape(N, HW, C2), s.reshape(N, 1, C2),
                          params["proj_w"], params["proj_b"],
                          h1.reshape(N, HW, C1))                                 # (N, HW, C1)

    # Head: 1x1 conv + SiLU + global average pool (fused), then folded classifier.
    feat = head_conv_gap(pr, params["head_w"], params["head_b"])                 # (N, 1, C_HEAD)

    # --- Effinet.fc_layer: Dropout(p=0.2) identity at inference; Linear(1000 -> num_classes) is
    #     folded with the EfficientNet classifier into clsfc_* (mathematically identical). ---
    # TODO(synk): training-mode dropout masking not implemented (inference semantics used).
    out = matmul_bias_act(feat.reshape(N, C_HEAD), params["clsfc_w"], params["clsfc_b"],
                          act="none", out_dtype=jnp.float32)                     # (N, num_classes)
    return out


if __name__ == "__main__":
    key = jax.random.PRNGKey(0)
    pkey, xkey = jax.random.split(key)
    params = init_params(pkey)
    x = jax.random.normal(xkey, (2, 3, 16, 16), jnp.float32)   # small NCHW RGB input

    out = jax.jit(effinet_forward)(params, x)
    out = jax.block_until_ready(out)
    assert out.shape == (2, NUM_CLASSES) and out.dtype == jnp.float32
    print("KERNEL_OK")
</pallas_src>

<mosaic_0001>
module attributes {stable_mosaic.version = 11 : i64} {
  func.func @_matmul_bias_act_kernel(%arg0: i32, %arg1: memref<128x27xbf16, #tpu.memory_space<vmem>>, %arg2: memref<27x128xbf16, #tpu.memory_space<vmem>>, %arg3: memref<1x128xf32, #tpu.memory_space<vmem>>, %arg4: memref<128x128xbf16, #tpu.memory_space<vmem>>) attributes {dimension_semantics = [#tpu.dimension_semantics<parallel>], iteration_bounds = array<i64: 1>, scalar_prefetch = 0 : i64, scratch_operands = 0 : i64, tpu.core_type = #tpu.core_type<tc>, window_params = [{transform_indices = @transform_0, window_bounds = array<i64: 128, 27>}, {pipeline_mode = #tpu.pipeline_mode<synchronous>, transform_indices = @transform_1, window_bounds = array<i64: 27, 128>}, {pipeline_mode = #tpu.pipeline_mode<synchronous>, transform_indices = @transform_2, window_bounds = array<i64: 1, 128>}, {transform_indices = @transform_3, window_bounds = array<i64: 128, 128>}]} {
    %c0 = arith.constant 0 : index
    %c0_0 = arith.constant 0 : index
    %0 = vector.load %arg1[%c0, %c0_0] : memref<128x27xbf16, #tpu.memory_space<vmem>>, vector<128x27xbf16>
    %c0_1 = arith.constant 0 : index
    %c0_2 = arith.constant 0 : index
    %1 = vector.load %arg2[%c0_1, %c0_2] : memref<27x128xbf16, #tpu.memory_space<vmem>>, vector<27x128xbf16>
    %cst = arith.constant dense<0.000000e+00> : vector<128x128xf32>
    %2 = tpu.matmul %0, %1, %cst {dimension_numbers = #tpu.dot_dimension_numbers<[1], [0], [0], [1], [0, 0, 1, 1], [], []>} : vector<128x27xbf16>, vector<27x128xbf16>, vector<128x128xf32> -> vector<128x128xf32>
    %c0_3 = arith.constant 0 : index
    %c0_4 = arith.constant 0 : index
    %3 = vector.load %arg3[%c0_3, %c0_4] : memref<1x128xf32, #tpu.memory_space<vmem>>, vector<1x128xf32>
    %4 = vector.broadcast %3 : vector<1x128xf32> to vector<128x128xf32>
    %5 = arith.addf %2, %4 : vector<128x128xf32>
    %6 = arith.negf %5 : vector<128x128xf32>
    %7 = math.exp %6 : vector<128x128xf32>
    %cst_5 = arith.constant 1.000000e+00 : f32
    %8 = vector.broadcast %cst_5 : f32 to vector<128x128xf32>
    %9 = arith.addf %8, %7 : vector<128x128xf32>
    %10 = arith.divf %8, %9 : vector<128x128xf32>
    %11 = arith.mulf %5, %10 : vector<128x128xf32>
    %12 = arith.truncf %11 : vector<128x128xf32> to vector<128x128xbf16>
    %c0_6 = arith.constant 0 : index
    %c0_7 = arith.constant 0 : index
    %13 = vector.load %arg4[%c0_6, %c0_7] : memref<128x128xbf16, #tpu.memory_space<vmem>>, vector<128x128xbf16>
    tpu.vector_store %arg4[%c0_6, %c0_7], %12 {strides = array<i32>} : memref<128x128xbf16, #tpu.memory_space<vmem>>, vector<128x128xbf16>,
    return
  }
  func.func @transform_0(%arg0: i32) -> (i32, i32) {
    %c0_i32 = arith.constant 0 : i32
    %c0_i32_0 = arith.constant 0 : i32
    return %arg0, %c0_i32 : i32, i32
  }
  func.func @transform_1(%arg0: i32) -> (i32, i32) {
    %c0_i32 = arith.constant 0 : i32
    %c0_i32_0 = arith.constant 0 : i32
    %c0_i32_1 = arith.constant 0 : i32
    return %c0_i32, %c0_i32_0 : i32, i32
  }
  func.func @transform_2(%arg0: i32) -> (i32, i32) {
    %c0_i32 = arith.constant 0 : i32
    %c0_i32_0 = arith.constant 0 : i32
    %c0_i32_1 = arith.constant 0 : i32
    return %c0_i32, %c0_i32_0 : i32, i32
  }
  func.func @transform_3(%arg0: i32) -> (i32, i32) {
    %c0_i32 = arith.constant 0 : i32
    %c0_i32_0 = arith.constant 0 : i32
    return %arg0, %c0_i32 : i32, i32
  }
}

module attributes {stable_mosaic.version = 11 : i64} {
  func.func @_matmul_bias_act_kernel(%arg0: i32, %arg1: memref<128x128xbf16, #tpu.memory_space<vmem>>, %arg2: memref<128x128xbf16, #tpu.memory_space<vmem>>, %arg3: memref<1x128xf32, #tpu.memory_space<vmem>>, %arg4: memref<128x128xbf16, #tpu.memory_space<vmem>>) attributes {dimension_semantics = [#tpu.dimension_semantics<parallel>], iteration_bounds = array<i64: 1>, scalar_prefetch = 0 : i64, scratch_operands = 0 : i64, tpu.core_type = #tpu.core_type<tc>, window_params = [{transform_indices = @transform_0, window_bounds = array<i64: 128, 128>}, {pipeline_mode = #tpu.pipeline_mode<synchronous>, transform_indices = @transform_1, window_bounds = array<i64: 128, 128>}, {pipeline_mode = #tpu.pipeline_mode<synchronous>, transform_indices = @transform_2, window_bounds = array<i64: 1, 128>}, {transform_indices = @transform_3, window_bounds = array<i64: 128, 128>}]} {
    %c0 = arith.constant 0 : index
    %c0_0 = arith.constant 0 : index
    %0 = vector.load %arg1[%c0, %c0_0] : memref<128x128xbf16, #tpu.memory_space<vmem>>, vector<128x128xbf16>
    %c0_1 = arith.constant 0 : index
    %c0_2 = arith.constant 0 : index
    %1 = vector.load %arg2[%c0_1, %c0_2] : memref<128x128xbf16, #tpu.memory_space<vmem>>, vector<128x128xbf16>
    %cst = arith.constant dense<0.000000e+00> : vector<128x128xf32>
    %2 = tpu.matmul %0, %1, %cst {dimension_numbers = #tpu.dot_dimension_numbers<[1], [0], [0], [1], [0, 0, 1, 1], [], []>} : vector<128x128xbf16>, vector<128x128xbf16>, vector<128x128xf32> -> vector<128x128xf32>
    %c0_3 = arith.constant 0 : index
    %c0_4 = arith.constant 0 : index
    %3 = vector.load %arg3[%c0_3, %c0_4] : memref<1x128xf32, #tpu.memory_space<vmem>>, vector<1x128xf32>
    %4 = vector.broadcast %3 : vector<1x128xf32> to vector<128x128xf32>
    %5 = arith.addf %2, %4 : vector<128x128xf32>
    %6 = arith.negf %5 : vector<128x128xf32>
    %7 = math.exp %6 : vector<128x128xf32>
    %cst_5 = arith.constant 1.000000e+00 : f32
    %8 = vector.broadcast %cst_5 : f32 to vector<128x128xf32>
    %9 = arith.addf %8, %7 : vector<128x128xf32>
    %10 = arith.divf %8, %9 : vector<128x128xf32>
    %11 = arith.mulf %5, %10 : vector<128x128xf32>
    %12 = arith.truncf %11 : vector<128x128xf32> to vector<128x128xbf16>
    %c0_6 = arith.constant 0 : index
    %c0_7 = arith.constant 0 : index
    %13 = vector.load %arg4[%c0_6, %c0_7] : memref<128x128xbf16, #tpu.memory_space<vmem>>, vector<128x128xbf16>
    tpu.vector_store %arg4[%c0_6, %c0_7], %12 {strides = array<i32>} : memref<128x128xbf16, #tpu.memory_space<vmem>>, vector<128x128xbf16>,
    return
  }
  func.func @transform_0(%arg0: i32) -> (i32, i32) {
    %c0_i32 = arith.constant 0 : i32
    %c0_i32_0 = arith.constant 0 : i32
    return %arg0, %c0_i32 : i32, i32
  }
  func.func @transform_1(%arg0: i32) -> (i32, i32) {
    %c0_i32 = arith.constant 0 : i32
    %c0_i32_0 = arith.constant 0 : i32
    %c0_i32_1 = arith.constant 0 : i32
    return %c0_i32, %c0_i32_0 : i32, i32
  }
  func.func @transform_2(%arg0: i32) -> (i32, i32) {
    %c0_i32 = arith.constant 0 : i32
    %c0_i32_0 = arith.constant 0 : i32
    %c0_i32_1 = arith.constant 0 : i32
    return %c0_i32, %c0_i32_0 : i32, i32
  }
  func.func @transform_3(%arg0: i32) -> (i32, i32) {
    %c0_i32 = arith.constant 0 : i32
    %c0_i32_0 = arith.constant 0 : i32
    return %arg0, %c0_i32 : i32, i32
  }
}

module attributes {stable_mosaic.version = 11 : i64} {
  func.func @_dw3x3_silu_pool_kernel(%arg0: i32, %arg1: memref<1x8x8x128xbf16, #tpu.memory_space<vmem>>, %arg2: memref<9x128xf32, #tpu.memory_space<vmem>>, %arg3: memref<1x128xf32, #tpu.memory_space<vmem>>, %arg4: memref<1x8x8x128xbf16, #tpu.memory_space<vmem>>, %arg5: memref<1x1x128xf32, #tpu.memory_space<vmem>>, %arg6: memref<10x10x128xf32, #tpu.memory_space<vmem>>) attributes {dimension_semantics = [#tpu.dimension_semantics<parallel>], iteration_bounds = array<i64: 2>, scalar_prefetch = 0 : i64, scratch_operands = 1 : i64, tpu.core_type = #tpu.core_type<tc>, window_params = [{transform_indices = @transform_0, window_bounds = array<i64: 1, 8, 8, 128>}, {pipeline_mode = #tpu.pipeline_mode<synchronous>, transform_indices = @transform_1, window_bounds = array<i64: 9, 128>}, {pipeline_mode = #tpu.pipeline_mode<synchronous>, transform_indices = @transform_2, window_bounds = array<i64: 1, 128>}, {transform_indices = @transform_3, window_bounds = array<i64: 1, 8, 8, 128>}, {transform_indices = @transform_4, window_bounds = array<i64: 1, 1, 128>}]} {
    %cst = arith.constant 0.000000e+00 : f32
    %0 = vector.broadcast %cst : f32 to vector<10x10x128xf32>
    %c0 = arith.constant 0 : index
    %c0_0 = arith.constant 0 : index
    %c0_1 = arith.constant 0 : index
    %1 = vector.load %arg6[%c0, %c0_0, %c0_1] : memref<10x10x128xf32, #tpu.memory_space<vmem>>, vector<10x10x128xf32>
    tpu.vector_store %arg6[%c0, %c0_0, %c0_1], %0 {strides = array<i32>} : memref<10x10x128xf32, #tpu.memory_space<vmem>>, vector<10x10x128xf32>,
    %c0_2 = arith.constant 0 : index
    %c0_3 = arith.constant 0 : index
    %c0_4 = arith.constant 0 : index
    %c0_5 = arith.constant 0 : index
    %2 = vector.load %arg1[%c0_2, %c0_3, %c0_4, %c0_5] : memref<1x8x8x128xbf16, #tpu.memory_space<vmem>>, vector<1x8x8x128xbf16>
    %3 = vector.shape_cast %2 : vector<1x8x8x128xbf16> to vector<8x8x128xbf16>
    %4 = arith.extf %3 : vector<8x8x128xbf16> to vector<8x8x128xf32>
    %c1 = arith.constant 1 : index
    %c1_6 = arith.constant 1 : index
    %c0_7 = arith.constant 0 : index
    %5 = vector.load %arg6[%c1, %c1_6, %c0_7] : memref<10x10x128xf32, #tpu.memory_space<vmem>>, vector<8x8x128xf32>
    tpu.vector_store %arg6[%c1, %c1_6, %c0_7], %4 {strides = array<i32>} : memref<10x10x128xf32, #tpu.memory_space<vmem>>, vector<8x8x128xf32>,
    %cst_8 = arith.constant 0.000000e+00 : f32
    %6 = vector.broadcast %cst_8 : f32 to vector<8x8x128xf32>
    %c0_9 = arith.constant 0 : index
    %c0_10 = arith.constant 0 : index
    %c0_11 = arith.constant 0 : index
    %7 = vector.load %arg6[%c0_9, %c0_10, %c0_11] : memref<10x10x128xf32, #tpu.memory_space<vmem>>, vector<8x8x128xf32>
    %c0_12 = arith.constant 0 : index
    %c0_13 = arith.constant 0 : index
    %8 = vector.load %arg2[%c0_12, %c0_13] : memref<9x128xf32, #tpu.memory_space<vmem>>, vector<1x128xf32>
    %9 = vector.shape_cast %8 : vector<1x128xf32> to vector<128xf32>
    %10 = vector.shape_cast %9 : vector<128xf32> to vector<1x1x128xf32>
    %11 = vector.broadcast %10 : vector<1x1x128xf32> to vector<8x8x128xf32>
    %12 = arith.mulf %7, %11 : vector<8x8x128xf32>
    %13 = arith.addf %6, %12 : vector<8x8x128xf32>
    %c0_14 = arith.constant 0 : index
    %c1_15 = arith.constant 1 : index
    %c0_16 = arith.constant 0 : index
    %14 = vector.load %arg6[%c0_14, %c1_15, %c0_16] : memref<10x10x128xf32, #tpu.memory_space<vmem>>, vector<8x8x128xf32>
    %c1_17 = arith.constant 1 : index
    %c0_18 = arith.constant 0 : index
    %15 = vector.load %arg2[%c1_17, %c0_18] : memref<9x128xf32, #tpu.memory_space<vmem>>, vector<1x128xf32>
    %16 = vector.shape_cast %15 : vector<1x128xf32> to vector<128xf32>
    %17 = vector.shape_cast %16 : vector<128xf32> to vector<1x1x128xf32>
    %18 = vector.broadcast %17 : vector<1x1x128xf32> to vector<8x8x128xf32>
    %19 = arith.mulf %14, %18 : vector<8x8x128xf32>
    %20 = arith.addf %13, %19 : vector<8x8x128xf32>
    %c0_19 = arith.constant 0 : index
    %c2 = arith.constant 2 : index
    %c0_20 = arith.constant 0 : index
    %21 = vector.load %arg6[%c0_19, %c2, %c0_20] : memref<10x10x128xf32, #tpu.memory_space<vmem>>, vector<8x8x128xf32>
    %c2_21 = arith.constant 2 : index
    %c0_22 = arith.constant 0 : index
    %22 = vector.load %arg2[%c2_21, %c0_22] : memref<9x128xf32, #tpu.memory_space<vmem>>, vector<1x128xf32>
    %23 = vector.shape_cast %22 : vector<1x128xf32> to vector<128xf32>
    %24 = vector.shape_cast %23 : vector<128xf32> to vector<1x1x128xf32>
    %25 = vector.broadcast %24 : vector<1x1x128xf32> to vector<8x8x128xf32>
    %26 = arith.mulf %21, %25 : vector<8x8x128xf32>
    %27 = arith.addf %20, %26 : vector<8x8x128xf32>
    %c1_23 = arith.constant 1 : index
    %c0_24 = arith.constant 0 : index
    %c0_25 = arith.constant 0 : index
    %28 = vector.load %arg6[%c1_23, %c0_24, %c0_25] : memref<10x10x128xf32, #tpu.memory_space<vmem>>, vector<8x8x128xf32>
    %c3 = arith.constant 3 : index
    %c0_26 = arith.constant 0 : index
    %29 = vector.load %arg2[%c3, %c0_26] : memref<9x128xf32, #tpu.memory_space<vmem>>, vector<1x128xf32>
    %30 = vector.shape_cast %29 : vector<1x128xf32> to vector<128xf32>
    %31 = vector.shape_cast %30 : vector<128xf32> to vector<1x1x128xf32>
    %32 = vector.broadcast %31 : vector<1x1x128xf32> to vector<8x8x128xf32>
    %33 = arith.mulf %28, %32 : vector<8x8x128xf32>
    %34 = arith.addf %27, %33 : vector<8x8x128xf32>
    %c1_27 = arith.constant 1 : index
    %c1_28 = arith.constant 1 : index
    %c0_29 = arith.constant 0 : index
    %35 = vector.load %arg6[%c1_27, %c1_28, %c0_29] : memref<10x10x128xf32, #tpu.memory_space<vmem>>, vector<8x8x128xf32>
    %c4 = arith.constant 4 : index
    %c0_30 = arith.constant 0 : index
    %36 = vector.load %arg2[%c4, %c0_30] : memref<9x128xf32, #tpu.memory_space<vmem>>, vector<1x128xf32>
    %37 = vector.shape_cast %36 : vector<1x128xf32> to vector<128xf32>
    %38 = vector.shape_cast %37 : vector<128xf32> to vector<1x1x128xf32>
    %39 = vector.broadcast %38 : vector<1x1x128xf32> to vector<8x8x128xf32>
    %40 = arith.mulf %35, %39 : vector<8x8x128xf32>
    %41 = arith.addf %34, %40 : vector<8x8x128xf32>
    %c1_31 = arith.constant 1 : index
    %c2_32 = arith.constant 2 : index
    %c0_33 = arith.constant 0 : index
    %42 = vector.load %arg6[%c1_31, %c2_32, %c0_33] : memref<10x10x128xf32, #tpu.memory_space<vmem>>, vector<8x8x128xf32>
    %c5 = arith.constant 5 : index
    %c0_34 = arith.constant 0 : index
    %43 = vector.load %arg2[%c5, %c0_34] : memref<9x128xf32, #tpu.memory_space<vmem>>, vector<1x128xf32>
    %44 = vector.shape_cast %43 : vector<1x128xf32> to vector<128xf32>
    %45 = vector.shape_cast %44 : vector<128xf32> to vector<1x1x128xf32>
    %46 = vector.broadcast %45 : vector<1x1x128xf32> to vector<8x8x128xf32>
    %47 = arith.mulf %42, %46 : vector<8x8x128xf32>
    %48 = arith.addf %41, %47 : vector<8x8x128xf32>
    %c2_35 = arith.constant 2 : index
    %c0_36 = arith.constant 0 : index
    %c0_37 = arith.constant 0 : index
    %49 = vector.load %arg6[%c2_35, %c0_36, %c0_37] : memref<10x10x128xf32, #tpu.memory_space<vmem>>, vector<8x8x128xf32>
    %c6 = arith.constant 6 : index
    %c0_38 = arith.constant 0 : index
    %50 = vector.load %arg2[%c6, %c0_38] : memref<9x128xf32, #tpu.memory_space<vmem>>, vector<1x128xf32>
    %51 = vector.shape_cast %50 : vector<1x128xf32> to vector<128xf32>
    %52 = vector.shape_cast %51 : vector<128xf32> to vector<1x1x128xf32>
    %53 = vector.broadcast %52 : vector<1x1x128xf32> to vector<8x8x128xf32>
    %54 = arith.mulf %49, %53 : vector<8x8x128xf32>
    %55 = arith.addf %48, %54 : vector<8x8x128xf32>
    %c2_39 = arith.constant 2 : index
    %c1_40 = arith.constant 1 : index
    %c0_41 = arith.constant 0 : index
    %56 = vector.load %arg6[%c2_39, %c1_40, %c0_41] : memref<10x10x128xf32, #tpu.memory_space<vmem>>, vector<8x8x128xf32>
    %c7 = arith.constant 7 : index
    %c0_42 = arith.constant 0 : index
    %57 = vector.load %arg2[%c7, %c0_42] : memref<9x128xf32, #tpu.memory_space<vmem>>, vector<1x128xf32>
    %58 = vector.shape_cast %57 : vector<1x128xf32> to vector<128xf32>
    %59 = vector.shape_cast %58 : vector<128xf32> to vector<1x1x128xf32>
    %60 = vector.broadcast %59 : vector<1x1x128xf32> to vector<8x8x128xf32>
    %61 = arith.mulf %56, %60 : vector<8x8x128xf32>
    %62 = arith.addf %55, %61 : vector<8x8x128xf32>
    %c2_43 = arith.constant 2 : index
    %c2_44 = arith.constant 2 : index
    %c0_45 = arith.constant 0 : index
    %63 = vector.load %arg6[%c2_43, %c2_44, %c0_45] : memref<10x10x128xf32, #tpu.memory_space<vmem>>, vector<8x8x128xf32>
    %c8 = arith.constant 8 : index
    %c0_46 = arith.constant 0 : index
    %64 = vector.load %arg2[%c8, %c0_46] : memref<9x128xf32, #tpu.memory_space<vmem>>, vector<1x128xf32>
    %65 = vector.shape_cast %64 : vector<1x128xf32> to vector<128xf32>
    %66 = vector.shape_cast %65 : vector<128xf32> to vector<1x1x128xf32>
    %67 = vector.broadcast %66 : vector<1x1x128xf32> to vector<8x8x128xf32>
    %68 = arith.mulf %63, %67 : vector<8x8x128xf32>
    %69 = arith.addf %62, %68 : vector<8x8x128xf32>
    %c0_47 = arith.constant 0 : index
    %c0_48 = arith.constant 0 : index
    %70 = vector.load %arg3[%c0_47, %c0_48] : memref<1x128xf32, #tpu.memory_space<vmem>>, vector<1x128xf32>
    %71 = vector.shape_cast %70 : vector<1x128xf32> to vector<128xf32>
    %72 = vector.shape_cast %71 : vector<128xf32> to vector<1x1x128xf32>
    %73 = vector.broadcast %72 : vector<1x1x128xf32> to vector<8x8x128xf32>
    %74 = arith.addf %69, %73 : vector<8x8x128xf32>
    %75 = arith.negf %74 : vector<8x8x128xf32>
    %76 = math.exp %75 : vector<8x8x128xf32>
    %cst_49 = arith.constant 1.000000e+00 : f32
    %77 = vector.broadcast %cst_49 : f32 to vector<8x8x128xf32>
    %78 = arith.addf %77, %76 : vector<8x8x128xf32>
    %79 = arith.divf %77, %78 : vector<8x8x128xf32>
    %80 = arith.mulf %74, %79 : vector<8x8x128xf32>
    %81 = vector.shape_cast %80 : vector<8x8x128xf32> to vector<1x8x8x128xf32>
    %82 = arith.truncf %81 : vector<1x8x8x128xf32> to vector<1x8x8x128xbf16>
    %c0_50 = arith.constant 0 : index
    %c0_51 = arith.constant 0 : index
    %c0_52 = arith.constant 0 : index
    %c0_53 = arith.constant 0 : index
    %83 = vector.load %arg4[%c0_50, %c0_51, %c0_52, %c0_53] : memref<1x8x8x128xbf16, #tpu.memory_space<vmem>>, vector<1x8x8x128xbf16>
    tpu.vector_store %arg4[%c0_50, %c0_51, %c0_52, %c0_53], %82 {strides = array<i32>} : memref<1x8x8x128xbf16, #tpu.memory_space<vmem>>, vector<1x8x8x128xbf16>,
    %cst_54 = arith.constant dense<0.000000e+00> : vector<128xf32>
    %84 = vector.multi_reduction <add>, %80, %cst_54 [0, 1] : vector<8x8x128xf32> to vector<128xf32>
    %cst_55 = arith.constant 1.562500e-02 : f32
    %85 = vector.broadcast %cst_55 : f32 to vector<128xf32>
    %86 = arith.mulf %84, %85 : vector<128xf32>
    %87 = vector.shape_cast %86 : vector<128xf32> to vector<1x1x128xf32>
    %c0_56 = arith.constant 0 : index
    %c0_57 = arith.constant 0 : index
    %c0_58 = arith.constant 0 : index
    %88 = vector.load %arg5[%c0_56, %c0_57, %c0_58] : memref<1x1x128xf32, #tpu.memory_space<vmem>>, vector<1x1x128xf32>
    tpu.vector_store %arg5[%c0_56, %c0_57, %c0_58], %87 {strides = array<i32>} : memref<1x1x128xf32, #tpu.memory_space<vmem>>, vector<1x1x128xf32>,
    return
  }
  func.func @transform_0(%arg0: i32) -> (i32, i32, i32, i32) {
    %c0_i32 = arith.constant 0 : i32
    %c0_i32_0 = arith.constant 0 : i32
    %c0_i32_1 = arith.constant 0 : i32
    %c0_i32_2 = arith.constant 0 : i32
    return %arg0, %c0_i32, %c0_i32_0, %c0_i32_1 : i32, i32, i32, i32
  }
  func.func @transform_1(%arg0: i32) -> (i32, i32) {
    %c0_i32 = arith.constant 0 : i32
    %c0_i32_0 = arith.constant 0 : i32
    %c0_i32_1 = arith.constant 0 : i32
    return %c0_i32, %c0_i32_0 : i32, i32
  }
  func.func @transform_2(%arg0: i32) -> (i32, i32) {
    %c0_i32 = arith.constant 0 : i32
    %c0_i32_0 = arith.constant 0 : i32
    %c0_i32_1 = arith.constant 0 : i32
    return %c0_i32, %c0_i32_0 : i32, i32
  }
  func.func @transform_3(%arg0: i32) -> (i32, i32, i32, i32) {
    %c0_i32 = arith.constant 0 : i32
    %c0_i32_0 = arith.constant 0 : i32
    %c0_i32_1 = arith.constant 0 : i32
    %c0_i32_2 = arith.constant 0 : i32
    return %arg0, %c0_i32, %c0_i32_0, %c0_i32_1 : i32, i32, i32, i32
  }
  func.func @transform_4(%arg0: i32) -> (i32, i32, i32) {
    %c0_i32 = arith.constant 0 : i32
    %c0_i32_0 = arith.constant 0 : i32
    %c0_i32_1 = arith.constant 0 : i32
    return %arg0, %c0_i32, %c0_i32_0 : i32, i32, i32
  }
}

module attributes {stable_mosaic.version = 11 : i64} {
  func.func @_matmul_bias_act_kernel(%arg0: i32, %arg1: memref<2x128xbf16, #tpu.memory_space<vmem>>, %arg2: memref<128x128xbf16, #tpu.memory_space<vmem>>, %arg3: memref<1x128xf32, #tpu.memory_space<vmem>>, %arg4: memref<2x128xbf16, #tpu.memory_space<vmem>>) attributes {dimension_semantics = [#tpu.dimension_semantics<parallel>], iteration_bounds = array<i64: 1>, scalar_prefetch = 0 : i64, scratch_operands = 0 : i64, tpu.core_type = #tpu.core_type<tc>, window_params = [{transform_indices = @transform_0, window_bounds = array<i64: 2, 128>}, {pipeline_mode = #tpu.pipeline_mode<synchronous>, transform_indices = @transform_1, window_bounds = array<i64: 128, 128>}, {pipeline_mode = #tpu.pipeline_mode<synchronous>, transform_indices = @transform_2, window_bounds = array<i64: 1, 128>}, {transform_indices = @transform_3, window_bounds = array<i64: 2, 128>}]} {
    %c0 = arith.constant 0 : index
    %c0_0 = arith.constant 0 : index
    %0 = vector.load %arg1[%c0, %c0_0] : memref<2x128xbf16, #tpu.memory_space<vmem>>, vector<2x128xbf16>
    %c0_1 = arith.constant 0 : index
    %c0_2 = arith.constant 0 : index
    %1 = vector.load %arg2[%c0_1, %c0_2] : memref<128x128xbf16, #tpu.memory_space<vmem>>, vector<128x128xbf16>
    %cst = arith.constant dense<0.000000e+00> : vector<2x128xf32>
    %2 = tpu.matmul %0, %1, %cst {dimension_numbers = #tpu.dot_dimension_numbers<[1], [0], [0], [1], [0, 0, 1, 1], [], []>} : vector<2x128xbf16>, vector<128x128xbf16>, vector<2x128xf32> -> vector<2x128xf32>
    %c0_3 = arith.constant 0 : index
    %c0_4 = arith.constant 0 : index
    %3 = vector.load %arg3[%c0_3, %c0_4] : memref<1x128xf32, #tpu.memory_space<vmem>>, vector<1x128xf32>
    %4 = vector.broadcast %3 : vector<1x128xf32> to vector<2x128xf32>
    %5 = arith.addf %2, %4 : vector<2x128xf32>
    %6 = arith.negf %5 : vector<2x128xf32>
    %7 = math.exp %6 : vector<2x128xf32>
    %cst_5 = arith.constant 1.000000e+00 : f32
    %8 = vector.broadcast %cst_5 : f32 to vector<2x128xf32>
    %9 = arith.addf %8, %7 : vector<2x128xf32>
    %10 = arith.divf %8, %9 : vector<2x128xf32>
    %11 = arith.mulf %5, %10 : vector<2x128xf32>
    %12 = arith.truncf %11 : vector<2x128xf32> to vector<2x128xbf16>
    %c0_6 = arith.constant 0 : index
    %c0_7 = arith.constant 0 : index
    %13 = vector.load %arg4[%c0_6, %c0_7] : memref<2x128xbf16, #tpu.memory_space<vmem>>, vector<2x128xbf16>
    tpu.vector_store %arg4[%c0_6, %c0_7], %12 {strides = array<i32>} : memref<2x128xbf16, #tpu.memory_space<vmem>>, vector<2x128xbf16>,
    return
  }
  func.func @transform_0(%arg0: i32) -> (i32, i32) {
    %c0_i32 = arith.constant 0 : i32
    %c0_i32_0 = arith.constant 0 : i32
    return %arg0, %c0_i32 : i32, i32
  }
  func.func @transform_1(%arg0: i32) -> (i32, i32) {
    %c0_i32 = arith.constant 0 : i32
    %c0_i32_0 = arith.constant 0 : i32
    %c0_i32_1 = arith.constant 0 : i32
    return %c0_i32, %c0_i32_0 : i32, i32
  }
  func.func @transform_2(%arg0: i32) -> (i32, i32) {
    %c0_i32 = arith.constant 0 : i32
    %c0_i32_0 = arith.constant 0 : i32
    %c0_i32_1 = arith.constant 0 : i32
    return %c0_i32, %c0_i32_0 : i32, i32
  }
  func.func @transform_3(%arg0: i32) -> (i32, i32) {
    %c0_i32 = arith.constant 0 : i32
    %c0_i32_0 = arith.constant 0 : i32
    return %arg0, %c0_i32 : i32, i32
  }
}

module attributes {stable_mosaic.version = 11 : i64} {
  func.func @_matmul_bias_act_kernel(%arg0: i32, %arg1: memref<2x128xbf16, #tpu.memory_space<vmem>>, %arg2: memref<128x128xbf16, #tpu.memory_space<vmem>>, %arg3: memref<1x128xf32, #tpu.memory_space<vmem>>, %arg4: memref<2x128xf32, #tpu.memory_space<vmem>>) attributes {dimension_semantics = [#tpu.dimension_semantics<parallel>], iteration_bounds = array<i64: 1>, scalar_prefetch = 0 : i64, scratch_operands = 0 : i64, tpu.core_type = #tpu.core_type<tc>, window_params = [{transform_indices = @transform_0, window_bounds = array<i64: 2, 128>}, {pipeline_mode = #tpu.pipeline_mode<synchronous>, transform_indices = @transform_1, window_bounds = array<i64: 128, 128>}, {pipeline_mode = #tpu.pipeline_mode<synchronous>, transform_indices = @transform_2, window_bounds = array<i64: 1, 128>}, {transform_indices = @transform_3, window_bounds = array<i64: 2, 128>}]} {
    %c0 = arith.constant 0 : index
    %c0_0 = arith.constant 0 : index
    %0 = vector.load %arg1[%c0, %c0_0] : memref<2x128xbf16, #tpu.memory_space<vmem>>, vector<2x128xbf16>
    %c0_1 = arith.constant 0 : index
    %c0_2 = arith.constant 0 : index
    %1 = vector.load %arg2[%c0_1, %c0_2] : memref<128x128xbf16, #tpu.memory_space<vmem>>, vector<128x128xbf16>
    %cst = arith.constant dense<0.000000e+00> : vector<2x128xf32>
    %2 = tpu.matmul %0, %1, %cst {dimension_numbers = #tpu.dot_dimension_numbers<[1], [0], [0], [1], [0, 0, 1, 1], [], []>} : vector<2x128xbf16>, vector<128x128xbf16>, vector<2x128xf32> -> vector<2x128xf32>
    %c0_3 = arith.constant 0 : index
    %c0_4 = arith.constant 0 : index
    %3 = vector.load %arg3[%c0_3, %c0_4] : memref<1x128xf32, #tpu.memory_space<vmem>>, vector<1x128xf32>
    %4 = vector.broadcast %3 : vector<1x128xf32> to vector<2x128xf32>
    %5 = arith.addf %2, %4 : vector<2x128xf32>
    %6 = arith.negf %5 : vector<2x128xf32>
    %7 = math.exp %6 : vector<2x128xf32>
    %cst_5 = arith.constant 1.000000e+00 : f32
    %8 = vector.broadcast %cst_5 : f32 to vector<2x128xf32>
    %9 = arith.addf %8, %7 : vector<2x128xf32>
    %10 = arith.divf %8, %9 : vector<2x128xf32>
    %c0_6 = arith.constant 0 : index
    %c0_7 = arith.constant 0 : index
    %11 = vector.load %arg4[%c0_6, %c0_7] : memref<2x128xf32, #tpu.memory_space<vmem>>, vector<2x128xf32>
    tpu.vector_store %arg4[%c0_6, %c0_7], %10 {strides = array<i32>} : memref<2x128xf32, #tpu.memory_space<vmem>>, vector<2x128xf32>,
    return
  }
  func.func @transform_0(%arg0: i32) -> (i32, i32) {
    %c0_i32 = arith.constant 0 : i32
    %c0_i32_0 = arith.constant 0 : i32
    return %arg0, %c0_i32 : i32, i32
  }
  func.func @transform_1(%arg0: i32) -> (i32, i32) {
    %c0_i32 = arith.constant 0 : i32
    %c0_i32_0 = arith.constant 0 : i32
    %c0_i32_1 = arith.constant 0 : i32
    return %c0_i32, %c0_i32_0 : i32, i32
  }
  func.func @transform_2(%arg0: i32) -> (i32, i32) {
    %c0_i32 = arith.constant 0 : i32
    %c0_i32_0 = arith.constant 0 : i32
    %c0_i32_1 = arith.constant 0 : i32
    return %c0_i32, %c0_i32_0 : i32, i32
  }
  func.func @transform_3(%arg0: i32) -> (i32, i32) {
    %c0_i32 = arith.constant 0 : i32
    %c0_i32_0 = arith.constant 0 : i32
    return %arg0, %c0_i32 : i32, i32
  }
}

module attributes {stable_mosaic.version = 11 : i64} {
  func.func @_se_proj_res_kernel(%arg0: i32, %arg1: i32, %arg2: memref<1x64x128xbf16, #tpu.memory_space<vmem>>, %arg3: memref<1x1x128xf32, #tpu.memory_space<vmem>>, %arg4: memref<128x128xbf16, #tpu.memory_space<vmem>>, %arg5: memref<1x128xf32, #tpu.memory_space<vmem>>, %arg6: memref<1x64x128xbf16, #tpu.memory_space<vmem>>, %arg7: memref<1x64x128xbf16, #tpu.memory_space<vmem>>) attributes {dimension_semantics = [#tpu.dimension_semantics<parallel>, #tpu.dimension_semantics<parallel>], iteration_bounds = array<i64: 2, 1>, scalar_prefetch = 0 : i64, scratch_operands = 0 : i64, tpu.core_type = #tpu.core_type<tc>, window_params = [{transform_indices = @transform_0, window_bounds = array<i64: 1, 64, 128>}, {transform_indices = @transform_1, window_bounds = array<i64: 1, 1, 128>}, {pipeline_mode = #tpu.pipeline_mode<synchronous>, transform_indices = @transform_2, window_bounds = array<i64: 128, 128>}, {pipeline_mode = #tpu.pipeline_mode<synchronous>, transform_indices = @transform_3, window_bounds = array<i64: 1, 128>}, {transform_indices = @transform_4, window_bounds = array<i64: 1, 64, 128>}, {transform_indices = @transform_5, window_bounds = array<i64: 1, 64, 128>}]} {
    %c0 = arith.constant 0 : index
    %c0_0 = arith.constant 0 : index
    %c0_1 = arith.constant 0 : index
    %0 = vector.load %arg2[%c0, %c0_0, %c0_1] : memref<1x64x128xbf16, #tpu.memory_space<vmem>>, vector<1x64x128xbf16>
    %1 = vector.shape_cast %0 : vector<1x64x128xbf16> to vector<64x128xbf16>
    %2 = arith.extf %1 : vector<64x128xbf16> to vector<64x128xf32>
    %c0_2 = arith.constant 0 : index
    %c0_3 = arith.constant 0 : index
    %c0_4 = arith.constant 0 : index
    %3 = vector.load %arg3[%c0_2, %c0_3, %c0_4] : memref<1x1x128xf32, #tpu.memory_space<vmem>>, vector<1x1x128xf32>
    %4 = vector.shape_cast %3 : vector<1x1x128xf32> to vector<1x128xf32>
    %5 = vector.broadcast %4 : vector<1x128xf32> to vector<64x128xf32>
    %6 = arith.mulf %2, %5 : vector<64x128xf32>
    %7 = arith.truncf %6 : vector<64x128xf32> to vector<64x128xbf16>
    %c0_5 = arith.constant 0 : index
    %c0_6 = arith.constant 0 : index
    %8 = vector.load %arg4[%c0_5, %c0_6] : memref<128x128xbf16, #tpu.memory_space<vmem>>, vector<128x128xbf16>
    %cst = arith.constant dense<0.000000e+00> : vector<64x128xf32>
    %9 = tpu.matmul %7, %8, %cst {dimension_numbers = #tpu.dot_dimension_numbers<[1], [0], [0], [1], [0, 0, 1, 1], [], []>} : vector<64x128xbf16>, vector<128x128xbf16>, vector<64x128xf32> -> vector<64x128xf32>
    %c0_7 = arith.constant 0 : index
    %c0_8 = arith.constant 0 : index
    %10 = vector.load %arg5[%c0_7, %c0_8] : memref<1x128xf32, #tpu.memory_space<vmem>>, vector<1x128xf32>
    %11 = vector.broadcast %10 : vector<1x128xf32> to vector<64x128xf32>
    %12 = arith.addf %9, %11 : vector<64x128xf32>
    %c0_9 = arith.constant 0 : index
    %c0_10 = arith.constant 0 : index
    %c0_11 = arith.constant 0 : index
    %13 = vector.load %arg6[%c0_9, %c0_10, %c0_11] : memref<1x64x128xbf16, #tpu.memory_space<vmem>>, vector<1x64x128xbf16>
    %14 = vector.shape_cast %13 : vector<1x64x128xbf16> to vector<64x128xbf16>
    %15 = arith.extf %14 : vector<64x128xbf16> to vector<64x128xf32>
    %16 = arith.addf %12, %15 : vector<64x128xf32>
    %17 = vector.shape_cast %16 : vector<64x128xf32> to vector<1x64x128xf32>
    %18 = arith.truncf %17 : vector<1x64x128xf32> to vector<1x64x128xbf16>
    %c0_12 = arith.constant 0 : index
    %c0_13 = arith.constant 0 : index
    %c0_14 = arith.constant 0 : index
    %19 = vector.load %arg7[%c0_12, %c0_13, %c0_14] : memref<1x64x128xbf16, #tpu.memory_space<vmem>>, vector<1x64x128xbf16>
    tpu.vector_store %arg7[%c0_12, %c0_13, %c0_14], %18 {strides = array<i32>} : memref<1x64x128xbf16, #tpu.memory_space<vmem>>, vector<1x64x128xbf16>,
    return
  }
  func.func @transform_0(%arg0: i32, %arg1: i32) -> (i32, i32, i32) {
    %c0_i32 = arith.constant 0 : i32
    %c0_i32_0 = arith.constant 0 : i32
    return %arg0, %arg1, %c0_i32 : i32, i32, i32
  }
  func.func @transform_1(%arg0: i32, %arg1: i32) -> (i32, i32, i32) {
    %c0_i32 = arith.constant 0 : i32
    %c0_i32_0 = arith.constant 0 : i32
    %c0_i32_1 = arith.constant 0 : i32
    return %arg0, %c0_i32, %c0_i32_0 : i32, i32, i32
  }
  func.func @transform_2(%arg0: i32, %arg1: i32) -> (i32, i32) {
    %c0_i32 = arith.constant 0 : i32
    %c0_i32_0 = arith.constant 0 : i32
    %c0_i32_1 = arith.constant 0 : i32
    return %c0_i32, %c0_i32_0 : i32, i32
  }
  func.func @transform_3(%arg0: i32, %arg1: i32) -> (i32, i32) {
    %c0_i32 = arith.constant 0 : i32
    %c0_i32_0 = arith.constant 0 : i32
    %c0_i32_1 = arith.constant 0 : i32
    return %c0_i32, %c0_i32_0 : i32, i32
  }
  func.func @transform_4(%arg0: i32, %arg1: i32) -> (i32, i32, i32) {
    %c0_i32 = arith.constant 0 : i32
    %c0_i32_0 = arith.constant 0 : i32
    return %arg0, %arg1, %c0_i32 : i32, i32, i32
  }
  func.func @transform_5(%arg0: i32, %arg1: i32) -> (i32, i32, i32) {
    %c0_i32 = arith.constant 0 : i32
    %c0_i32_0 = arith.constant 0 : i32
    return %arg0, %arg1, %c0_i32 : i32, i32, i32
  }
}

module attributes {stable_mosaic.version = 11 : i64} {
  func.func @_head_gap_kernel(%arg0: i32, %arg1: i32, %arg2: memref<1x64x128xbf16, #tpu.memory_space<vmem>>, %arg3: memref<128x128xbf16, #tpu.memory_space<vmem>>, %arg4: memref<1x128xf32, #tpu.memory_space<vmem>>, %arg5: memref<1x1x128xf32, #tpu.memory_space<vmem>>, %arg6: memref<1x128xf32, #tpu.memory_space<vmem>>) attributes {dimension_semantics = [#tpu.dimension_semantics<parallel>, #tpu.dimension_semantics<arbitrary>], iteration_bounds = array<i64: 2, 1>, scalar_prefetch = 0 : i64, scratch_operands = 1 : i64, tpu.core_type = #tpu.core_type<tc>, window_params = [{transform_indices = @transform_0, window_bounds = array<i64: 1, 64, 128>}, {pipeline_mode = #tpu.pipeline_mode<synchronous>, transform_indices = @transform_1, window_bounds = array<i64: 128, 128>}, {pipeline_mode = #tpu.pipeline_mode<synchronous>, transform_indices = @transform_2, window_bounds = array<i64: 1, 128>}, {transform_indices = @transform_3, window_bounds = array<i64: 1, 1, 128>}]} {
    %c0_i32 = arith.constant 0 : i32
    %0 = arith.cmpi eq, %arg1, %c0_i32 : i32
    %1 = arith.extui %0 : i1 to i32
    %c0_i32_0 = arith.constant 0 : i32
    %2 = arith.cmpi ne, %1, %c0_i32_0 : i32
    scf.if %2 {
      %cst_17 = arith.constant 0.000000e+00 : f32
      %33 = vector.broadcast %cst_17 : f32 to vector<1x128xf32>
      %c0_18 = arith.constant 0 : index
      %c0_19 = arith.constant 0 : index
      %34 = vector.load %arg6[%c0_18, %c0_19] : memref<1x128xf32, #tpu.memory_space<vmem>>, vector<1x128xf32>
      tpu.vector_store %arg6[%c0_18, %c0_19], %33 {strides = array<i32>} : memref<1x128xf32, #tpu.memory_space<vmem>>, vector<1x128xf32>,
    } else {
    }
    %c0 = arith.constant 0 : index
    %c0_1 = arith.constant 0 : index
    %c0_2 = arith.constant 0 : index
    %3 = vector.load %arg2[%c0, %c0_1, %c0_2] : memref<1x64x128xbf16, #tpu.memory_space<vmem>>, vector<1x64x128xbf16>
    %4 = vector.shape_cast %3 : vector<1x64x128xbf16> to vector<64x128xbf16>
    %c0_3 = arith.constant 0 : index
    %c0_4 = arith.constant 0 : index
    %5 = vector.load %arg3[%c0_3, %c0_4] : memref<128x128xbf16, #tpu.memory_space<vmem>>, vector<128x128xbf16>
    %cst = arith.constant dense<0.000000e+00> : vector<64x128xf32>
    %6 = tpu.matmul %4, %5, %cst {dimension_numbers = #tpu.dot_dimension_numbers<[1], [0], [0], [1], [0, 0, 1, 1], [], []>} : vector<64x128xbf16>, vector<128x128xbf16>, vector<64x128xf32> -> vector<64x128xf32>
    %c0_5 = arith.constant 0 : index
    %c0_6 = arith.constant 0 : index
    %7 = vector.load %arg4[%c0_5, %c0_6] : memref<1x128xf32, #tpu.memory_space<vmem>>, vector<1x128xf32>
    %8 = vector.broadcast %7 : vector<1x128xf32> to vector<64x128xf32>
    %9 = arith.addf %6, %8 : vector<64x128xf32>
    %10 = arith.negf %9 : vector<64x128xf32>
    %11 = math.exp %10 : vector<64x128xf32>
    %cst_7 = arith.constant 1.000000e+00 : f32
    %12 = vector.broadcast %cst_7 : f32 to vector<64x128xf32>
    %13 = arith.addf %12, %11 : vector<64x128xf32>
    %14 = arith.divf %12, %13 : vector<64x128xf32>
    %15 = arith.mulf %9, %14 : vector<64x128xf32>
    %c64_i32 = arith.constant 64 : i32
    %16 = arith.muli %arg1, %c64_i32 : i32
    %c64_i32_8 = arith.constant 64 : i32
    %17 = arith.subi %c64_i32_8, %16 : i32
    %18 = tpu.iota {dimensions = array<i32: 0>} : vector<64x1xi32>
    %19 = vector.broadcast %17 : i32 to vector<64x1xi32>
    %20 = arith.cmpi slt, %18, %19 : vector<64x1xi32>
    %cst_9 = arith.constant 0.000000e+00 : f32
    %21 = vector.shape_cast %20 : vector<64x1xi1> to vector<64x1xi1>
    %22 = vector.broadcast %21 : vector<64x1xi1> to vector<64x128xi1>
    %23 = vector.broadcast %cst_9 : f32 to vector<64x128xf32>
    %24 = arith.select %22, %15, %23 : vector<64x128xi1>, vector<64x128xf32>
    %c0_10 = arith.constant 0 : index
    %c0_11 = arith.constant 0 : index
    %25 = vector.load %arg6[%c0_10, %c0_11] : memref<1x128xf32, #tpu.memory_space<vmem>>, vector<1x128xf32>
    %cst_12 = arith.constant dense<0.000000e+00> : vector<128xf32>
    %26 = vector.multi_reduction <add>, %24, %cst_12 [0] : vector<64x128xf32> to vector<128xf32>
    %27 = vector.shape_cast %26 : vector<128xf32> to vector<1x128xf32>
    %28 = arith.addf %25, %27 : vector<1x128xf32>
    %c0_13 = arith.constant 0 : index
    %c0_14 = arith.constant 0 : index
    %29 = vector.load %arg6[%c0_13, %c0_14] : memref<1x128xf32, #tpu.memory_space<vmem>>, vector<1x128xf32>
    tpu.vector_store %arg6[%c0_13, %c0_14], %28 {strides = array<i32>} : memref<1x128xf32, #tpu.memory_space<vmem>>, vector<1x128xf32>,
    %c0_i32_15 = arith.constant 0 : i32
    %30 = arith.cmpi eq, %arg1, %c0_i32_15 : i32
    %31 = arith.extui %30 : i1 to i32
    %c0_i32_16 = arith.constant 0 : i32
    %32 = arith.cmpi ne, %31, %c0_i32_16 : i32
    scf.if %32 {
      %c0_17 = arith.constant 0 : index
      %c0_18 = arith.constant 0 : index
      %33 = vector.load %arg6[%c0_17, %c0_18] : memref<1x128xf32, #tpu.memory_space<vmem>>, vector<1x128xf32>
      %cst_19 = arith.constant 1.562500e-02 : f32
      %34 = vector.broadcast %cst_19 : f32 to vector<1x128xf32>
      %35 = arith.mulf %33, %34 : vector<1x128xf32>
      %36 = vector.shape_cast %35 : vector<1x128xf32> to vector<1x1x128xf32>
      %c0_20 = arith.constant 0 : index
      %c0_21 = arith.constant 0 : index
      %c0_22 = arith.constant 0 : index
      %37 = vector.load %arg5[%c0_20, %c0_21, %c0_22] : memref<1x1x128xf32, #tpu.memory_space<vmem>>, vector<1x1x128xf32>
      tpu.vector_store %arg5[%c0_20, %c0_21, %c0_22], %36 {strides = array<i32>} : memref<1x1x128xf32, #tpu.memory_space<vmem>>, vector<1x1x128xf32>,
    } else {
    }
    return
  }
  func.func @transform_0(%arg0: i32, %arg1: i32) -> (i32, i32, i32) {
    %c0_i32 = arith.constant 0 : i32
    %c0_i32_0 = arith.constant 0 : i32
    return %arg0, %arg1, %c0_i32 : i32, i32, i32
  }
  func.func @transform_1(%arg0: i32, %arg1: i32) -> (i32, i32) {
    %c0_i32 = arith.constant 0 : i32
    %c0_i32_0 = arith.constant 0 : i32
    %c0_i32_1 = arith.constant 0 : i32
    return %c0_i32, %c0_i32_0 : i32, i32
  }
  func.func @transform_2(%arg0: i32, %arg1: i32) -> (i32, i32) {
    %c0_i32 = arith.constant 0 : i32
    %c0_i32_0 = arith.constant 0 : i32
    %c0_i32_1 = arith.constant 0 : i32
    return %c0_i32, %c0_i32_0 : i32, i32
  }
  func.func @transform_3(%arg0: i32, %arg1: i32) -> (i32, i32, i32) {
    %c0_i32 = arith.constant 0 : i32
    %c0_i32_0 = arith.constant 0 : i32
    %c0_i32_1 = arith.constant 0 : i32
    return %arg0, %c0_i32, %c0_i32_0 : i32, i32, i32
  }
}

module attributes {stable_mosaic.version = 11 : i64} {
  func.func @_matmul_bias_act_kernel(%arg0: i32, %arg1: memref<2x128xf32, #tpu.memory_space<vmem>>, %arg2: memref<128x1xf32, #tpu.memory_space<vmem>>, %arg3: memref<1x1xf32, #tpu.memory_space<vmem>>, %arg4: memref<2x1xf32, #tpu.memory_space<vmem>>) attributes {dimension_semantics = [#tpu.dimension_semantics<parallel>], iteration_bounds = array<i64: 1>, scalar_prefetch = 0 : i64, scratch_operands = 0 : i64, tpu.core_type = #tpu.core_type<tc>, window_params = [{transform_indices = @transform_0, window_bounds = array<i64: 2, 128>}, {pipeline_mode = #tpu.pipeline_mode<synchronous>, transform_indices = @transform_1, window_bounds = array<i64: 128, 1>}, {pipeline_mode = #tpu.pipeline_mode<synchronous>, transform_indices = @transform_2, window_bounds = array<i64: 1, 1>}, {transform_indices = @transform_3, window_bounds = array<i64: 2, 1>}]} {
    %c0 = arith.constant 0 : index
    %c0_0 = arith.constant 0 : index
    %0 = vector.load %arg1[%c0, %c0_0] : memref<2x128xf32, #tpu.memory_space<vmem>>, vector<2x128xf32>
    %c0_1 = arith.constant 0 : index
    %c0_2 = arith.constant 0 : index
    %1 = vector.load %arg2[%c0_1, %c0_2] : memref<128x1xf32, #tpu.memory_space<vmem>>, vector<128x1xf32>
    %cst = arith.constant dense<0.000000e+00> : vector<2x1xf32>
    %2 = tpu.matmul %0, %1, %cst {dimension_numbers = #tpu.dot_dimension_numbers<[1], [0], [0], [1], [0, 0, 1, 1], [], []>} : vector<2x128xf32>, vector<128x1xf32>, vector<2x1xf32> -> vector<2x1xf32>
    %c0_3 = arith.constant 0 : index
    %c0_4 = arith.constant 0 : index
    %3 = vector.load %arg3[%c0_3, %c0_4] : memref<1x1xf32, #tpu.memory_space<vmem>>, vector<1x1xf32>
    %4 = vector.broadcast %3 : vector<1x1xf32> to vector<2x1xf32>
    %5 = arith.addf %2, %4 : vector<2x1xf32>
    %c0_5 = arith.constant 0 : index
    %c0_6 = arith.constant 0 : index
    %6 = vector.load %arg4[%c0_5, %c0_6] : memref<2x1xf32, #tpu.memory_space<vmem>>, vector<2x1xf32>
    tpu.vector_store %arg4[%c0_5, %c0_6], %5 {strides = array<i32>} : memref<2x1xf32, #tpu.memory_space<vmem>>, vector<2x1xf32>,
    return
  }
  func.func @transform_0(%arg0: i32) -> (i32, i32) {
    %c0_i32 = arith.constant 0 : i32
    %c0_i32_0 = arith.constant 0 : i32
    return %arg0, %c0_i32 : i32, i32
  }
  func.func @transform_1(%arg0: i32) -> (i32, i32) {
    %c0_i32 = arith.constant 0 : i32
    %c0_i32_0 = arith.constant 0 : i32
    %c0_i32_1 = arith.constant 0 : i32
    return %c0_i32, %c0_i32_0 : i32, i32
  }
  func.func @transform_2(%arg0: i32) -> (i32, i32) {
    %c0_i32 = arith.constant 0 : i32
    %c0_i32_0 = arith.constant 0 : i32
    %c0_i32_1 = arith.constant 0 : i32
    return %c0_i32, %c0_i32_0 : i32, i32
  }
  func.func @transform_3(%arg0: i32) -> (i32, i32) {
    %c0_i32 = arith.constant 0 : i32
    %c0_i32_0 = arith.constant 0 : i32
    return %arg0, %c0_i32 : i32, i32
  }
}

</mosaic_0001>

<bundles_post_ra>
// kernel: effinet_forward.10
= control target key start
LH: loop header
LB: loop body
LE: loop exit
PB: predicated region body
PF: predicated region fallthrough
CT: control target
= control target key end

     0   :  { %s844_s15 = smov 0   ;;  %s1074_s0 = inlined_call_operand.vmem [shape: bf16[2,8,8,128], index: 0, kind: input, shape index: {}]   ;;  %s1075_s1 = inlined_call_operand.vmem [shape: f32[9,128], index: 1, kind: input, shape index: {}]   ;;  %s1076_s2 = inlined_call_operand.vmem [shape: f32[1,128], index: 2, kind: input, shape index: {}]   ;;  %s1077_s3 = inlined_call_operand.vmem [shape: bf16[2,8,8,128], index: 3, kind: output, shape index: {0}]   ;;  %s1078_s4 = inlined_call_operand.vmem [shape: f32[2,1,128], index: 4, kind: output, shape index: {1}]  }
   0x1 LB: > { %s696_s16 = sadd.s32 4294967295, %s816_s15   ;;  %p700_p0 = scmp.ge.s32.totalorder %s816_s15, 1  ;;  %s816_s15 = sphi %s844_s15, %s15_s15  }
   0x2   : > { %p165_p1 = scmp.lt.s32.totalorder %s816_s15, 3 }
   0x4   : > { %p166_p2 = pnand %p700_p0, %p165_p1 }
   0x5   : > { %p852_p3 = scmp.lt.s32.totalorder (!%p166_p2), %s696_s16, 1  ;;  %v818_v0 = vmov (!%p166_p2), 0.0   ;;  %v863_v1 = vld [vmem:[%s1075_s1] ss:$0 sm:$0xff] (!%p166_p2)  ;;  %v706_v2 = vld [vmem:[%s1075_s1 + $0x1] ss:$0 sm:$0xff] (!%p166_p2) }
   0x6   : > { %169 = sbr.rel (%p166_p2) target bundleno = 113 (0x71), region = 32  ;;  %207 = vst [vmem:[#allocation2] sm:$0xff] (!%p166_p2), %v818_v0  ;;  %208 = vst [vmem:[#allocation2 + $0x8] sm:$0x3] (!%p166_p2), %v818_v0  ;;  %v265_v6 = vmul.f32 (!%p166_p2), 0.0, %v863_v1 }
   0x7   : > { %209 = vst [vmem:[#allocation2 + $0x10] sm:$0xff] (!%p166_p2), %v818_v0  ;;  %210 = vst [vmem:[#allocation2 + $0x18] sm:$0x3] (!%p166_p2), %v818_v0  ;;  %v878_v12 = vld [vmem:[%s1075_s1 + $0x2] ss:$0 sm:$0xff] (!%p166_p2) }
   0x8   : > { %211 = vst [vmem:[#allocation2 + $0x20] sm:$0xff] (!%p166_p2), %v818_v0  ;;  %212 = vst [vmem:[#allocation2 + $0x28] sm:$0x3] (!%p166_p2), %v818_v0  ;;  %v709_v19 = vld [vmem:[%s1075_s1 + $0x4] ss:$0 sm:$0xff] (!%p166_p2) }
   0x9   : > { %213 = vst [vmem:[#allocation2 + $0x30] sm:$0xff] (!%p166_p2), %v818_v0  ;;  %214 = vst [vmem:[#allocation2 + $0x38] sm:$0x3] (!%p166_p2), %v818_v0  ;;  %v888_v21 = vld [vmem:[%s1075_s1 + $0x7] ss:$0 sm:$0xff] (!%p166_p2) }
   0xa   : > { %215 = vst [vmem:[#allocation2 + $0x40] sm:$0xff] (!%p166_p2), %v818_v0  ;;  %216 = vst [vmem:[#allocation2 + $0x48] sm:$0x3] (!%p166_p2), %v818_v0  ;;  %v910_v35 = vld [vmem:[%s1075_s1 + $0x3] ss:$0 sm:$0xff] (!%p166_p2) }
   0xb   : > { %217 = vst [vmem:[#allocation2 + $0x50] sm:$0xff] (!%p166_p2), %v818_v0  ;;  %218 = vst [vmem:[#allocation2 + $0x58] sm:$0x3] (!%p166_p2), %v818_v0  ;;  %v922_v39 = vld [vmem:[%s1075_s1 + $0x5] ss:$0 sm:$0xff] (!%p166_p2) }
   0xc   : > { %219 = vst [vmem:[#allocation2 + $0x60] sm:$0xff] (!%p166_p2), %v818_v0  ;;  %220 = vst [vmem:[#allocation2 + $0x68] sm:$0x3] (!%p166_p2), %v818_v0  ;;  %v927_v40 = vld [vmem:[%s1075_s1 + $0x6] ss:$0 sm:$0xff] (!%p166_p2) }
   0xd   : > { %221 = vst [vmem:[#allocation2 + $0x70] sm:$0xff] %v818_v0  ;;  %222 = vst [vmem:[#allocation2 + $0x78] sm:$0x3] %v818_v0  ;;  %s1081_s16 = smov (!%p852_p3, %s696_s16), 1  ;;  %v281_v17 = vld [vmem:[#allocation2 + $0x1] sm:$0xff] }
   0xe   : > { %223 = vst [vmem:[#allocation2 + $0x80] sm:$0xff] %v818_v0  ;;  %224 = vst [vmem:[#allocation2 + $0x88] sm:$0x3] %v818_v0  ;;  %s725_s20 = sshll.u32 %s1081_s16, 5  ;;  %v310_v18 = vld [vmem:[#allocation2 + $0x2] sm:$0xff]  ;;  %v294_v20 = vmul.f32 %v706_v2, %v281_v17 }
   0xf   : > { %225 = vst [vmem:[#allocation2 + $0x90] sm:$0xff] %v818_v0  ;;  %226 = vst [vmem:[#allocation2 + $0x98] sm:$0x3] %v818_v0  ;;  %s198_s23 = scalar_lea.vmem %s1074_s0, %s725_s20  ;;  %v323_v22 = vmul.f32 %v878_v12, %v310_v18  ;;  %v932_v41 = vld [vmem:[%s1075_s1 + $0x8] ss:$0 sm:$0xff]  ;;  %s1057_s21 = scalar_lea.vmem %s1077_s3, %s725_s20 }
  0x10   : > { %v728_v3 = vld [vmem:[%s198_s23] sm:$0xff]   ;;  %v763_v4 = vld [vmem:[%s198_s23 + $0x8] sm:$0xff]   ;;  %v764_v5 = vld [vmem:[%s198_s23 + $0x10] sm:$0xff]   ;;  %v302_v24 = vadd.f32 %v294_v20, %v265_v6 }
  0x11   : > { %v729_v7 = vunpack.c.l.bf16 %v728_v3  ;;  %v730_v8 = vunpack.c.h.bf16 %v728_v3  ;;  %v733_v9 = vunpack.c.l.bf16 %v763_v4  ;;  %v734_v10 = vunpack.c.h.bf16 %v763_v4  ;;  %v765_v11 = vld [vmem:[%s198_s23 + $0x18] sm:$0xff]   ;;  %s206_s23 = scalar_lea.vmem %s1078_s4, %s1081_s16 }
  0x12   : > { %v737_v13 = vunpack.c.l.bf16 %v764_v5  ;;  %v738_v14 = vunpack.c.h.bf16 %v764_v5  ;;  %v741_v15 = vunpack.c.l.bf16 %v765_v11  ;;  %v880_v16 = vunpack.c.h.bf16 %v765_v11 }
  0x13   : > { %244 = vst [vmem:[#allocation2 + $0x11] sm:$0xff] %v729_v7  ;;  %245 = vst [vmem:[#allocation2 + $0x21] sm:$0xff] %v730_v8  ;;  %v295_v23 = vmul.f32 %v729_v7, %v706_v2  ;;  %v381_v25 = vmul.f32 %v729_v7, %v709_v19  ;;  %v892_v26 = vmul.f32 %v730_v8, %v709_v19 }
  0x14   : > { %246 = vst [vmem:[#allocation2 + $0x31] sm:$0xff] %v733_v9  ;;  %247 = vst [vmem:[#allocation2 + $0x41] sm:$0xff] %v734_v10  ;;  %v895_v27 = vmul.f32 %v730_v8, %v888_v21  ;;  %v898_v28 = vmul.f32 %v733_v9, %v888_v21  ;;  %v296_v29 = vmul.f32 %v730_v8, %v706_v2 }
  0x15   : > { %248 = vst [vmem:[#allocation2 + $0x51] sm:$0xff] %v737_v13  ;;  %249 = vst [vmem:[#allocation2 + $0x61] sm:$0xff] %v738_v14  ;;  %v297_v30 = vmul.f32 %v733_v9, %v706_v2  ;;  %v900_v31 = vmul.f32 %v733_v9, %v709_v19  ;;  %v902_v32 = vmul.f32 %v734_v10, %v709_v19 }
  0x16   : > { %250 = vst [vmem:[#allocation2 + $0x71] sm:$0xff] %v741_v15  ;;  %251 = vst [vmem:[#allocation2 + $0x81] sm:$0xff] %v880_v16  ;;  %v905_v33 = vmul.f32 %v734_v10, %v888_v21  ;;  %v331_v34 = vadd.f32 %v323_v22, %v302_v24  ;;  %v913_v36 = vmul.f32 %v737_v13, %v888_v21 }
  0x17   : > { %v915_v37 = vmul.f32 %v734_v10, %v706_v2  ;;  %v917_v38 = vmul.f32 %v737_v13, %v706_v2  ;;  %v934_v42 = vmul.f32 %v737_v13, %v709_v19  ;;  %v936_v43 = vmul.f32 %v738_v14, %v709_v19 }
  0x18   : > { %v939_v44 = vmul.f32 %v738_v14, %v888_v21  ;;  %v942_v45 = vmul.f32 %v741_v15, %v888_v21  ;;  %v944_v49 = vmul.f32 %v738_v14, %v706_v2  ;;  %v946_v50 = vmul.f32 %v741_v15, %v706_v2 }
  0x19   : > { %v948_v51 = vmul.f32 %v741_v15, %v709_v19  ;;  %v951_v52 = vmul.f32 %v880_v16, %v709_v19 }
  0x1a   : > { %v253_v46 = vld [vmem:[#allocation2 + $0x10] sm:$0xff]  ;;  %v340_v48 = vld [vmem:[#allocation2 + $0x20] sm:$0xff] }
  0x1b   : > { %v311_v47 = vld [vmem:[#allocation2 + $0x12] sm:$0xff]  ;;  %v266_v53 = vmul.f32 %v863_v1, %v253_v46  ;;  %v352_v55 = vmul.f32 %v910_v35, %v253_v46  ;;  %v353_v56 = vmul.f32 %v910_v35, %v340_v48  ;;  %v398_v57 = vld [vmem:[#allocation2 + $0x22] sm:$0xff]  ;;  %v440_v62 = vmul.f32 %v927_v40, %v340_v48 }
  0x1c   : > { %v324_v54 = vmul.f32 %v878_v12, %v311_v47  ;;  %v428_v58 = vld [vmem:[#allocation2 + $0x30] sm:$0xff]  ;;  %v410_v60 = vmul.f32 %v922_v39, %v311_v47  ;;  %v411_v61 = vmul.f32 %v922_v39, %v398_v57  ;;  %v498_v3 = vmul.f32 %v932_v41, %v398_v57  ;;  %v342_v9 = vld [vmem:[#allocation2 + $0x40] sm:$0xff] }
  0x1d   : > { %v486_v59 = vld [vmem:[#allocation2 + $0x32] sm:$0xff]  ;;  %v441_v63 = vmul.f32 %v927_v40, %v428_v58  ;;  %v303_v0 = vadd.f32 %v295_v23, %v266_v53  ;;  %v360_v2 = vadd.f32 %v352_v55, %v331_v34  ;;  %v267_v5 = vmul.f32 %v863_v1, %v340_v48  ;;  %v400_v15 = vld [vmem:[#allocation2 + $0x42] sm:$0xff] }
  0x1e   : > { %v499_v4 = vmul.f32 %v932_v41, %v486_v59  ;;  %v268_v6 = vmul.f32 %v863_v1, %v428_v58  ;;  %v325_v7 = vmul.f32 %v878_v12, %v398_v57  ;;  %v326_v8 = vmul.f32 %v878_v12, %v486_v59  ;;  %v430_v22 = vld [vmem:[#allocation2 + $0x50] sm:$0xff] }
  0x1f   : > { %v332_v10 = vadd.f32 %v324_v54, %v303_v0  ;;  %v389_v11 = vadd.f32 %v381_v25, %v360_v2  ;;  %v354_v13 = vmul.f32 %v910_v35, %v428_v58  ;;  %v355_v14 = vmul.f32 %v910_v35, %v342_v9  ;;  %v488_v47 = vld [vmem:[#allocation2 + $0x52] sm:$0xff] }
  0x20   : > { %v304_v17 = vadd.f32 %v296_v29, %v267_v5  ;;  %v305_v18 = vadd.f32 %v297_v30, %v268_v6  ;;  %v412_v19 = vmul.f32 %v922_v39, %v486_v59  ;;  %v413_v20 = vmul.f32 %v922_v39, %v400_v15 }
  0x21   : > { %v361_v23 = vadd.f32 %v353_v56, %v332_v10  ;;  %v418_v24 = vadd.f32 %v410_v60, %v389_v11  ;;  %v442_v34 = vmul.f32 %v927_v40, %v342_v9  ;;  %v443_v46 = vmul.f32 %v927_v40, %v430_v22 }
  0x22   : > { %v333_v25 = vadd.f32 %v325_v7, %v304_v17  ;;  %v334_v48 = vadd.f32 %v326_v8, %v305_v18  ;;  %v500_v53 = vmul.f32 %v932_v41, %v400_v15  ;;  %v501_v54 = vmul.f32 %v932_v41, %v488_v47  ;;  %v344_v7 = vld [vmem:[#allocation2 + $0x60] sm:$0xff] }
  0x23   : > { %v390_v29 = vadd.f32 %v892_v26, %v361_v23  ;;  %v448_v30 = vadd.f32 %v440_v62, %v418_v24  ;;  %v269_v55 = vmul.f32 %v863_v1, %v342_v9  ;;  %v270_v57 = vmul.f32 %v863_v1, %v430_v22  ;;  %v986_v26 = vld [vmem:[%s1076_s2] ss:$0 sm:$0xff]  ;;  %v432_v23 = vld [vmem:[#allocation2 + $0x70] sm:$0xff] }
  0x24   : > { %v362_v56 = vadd.f32 %v354_v13, %v333_v25  ;;  %v363_v58 = vadd.f32 %v355_v14, %v334_v48  ;;  %v327_v59 = vmul.f32 %v878_v12, %v400_v15  ;;  %v328_v60 = vmul.f32 %v878_v12, %v488_v47  ;;  %v402_v13 = vld [vmem:[#allocation2 + $0x62] sm:$0xff] }
  0x25   : > { %v419_v0 = vadd.f32 %v411_v61, %v390_v29  ;;  %v477_v2 = vadd.f32 %v895_v27, %v448_v30  ;;  %v306_v5 = vadd.f32 %v915_v37, %v269_v55  ;;  %v307_v6 = vadd.f32 %v917_v38, %v270_v57 }
  0x26   : > { %v391_v62 = vadd.f32 %v900_v31, %v362_v56  ;;  %v392_v8 = vadd.f32 %v902_v32, %v363_v58  ;;  %v356_v9 = vmul.f32 %v910_v35, %v430_v22  ;;  %v357_v61 = vmul.f32 %v910_v35, %v344_v7 }
  0x27   : > { %v449_v10 = vadd.f32 %v441_v63, %v419_v0  ;;  %v506_v27 = vadd.f32 %v498_v3, %v477_v2  ;;  %v335_v11 = vadd.f32 %v327_v59, %v306_v5  ;;  %v336_v37 = vadd.f32 %v328_v60, %v307_v6 }
  0x28   : > { %v420_v38 = vadd.f32 %v412_v19, %v391_v62  ;;  %v421_v14 = vadd.f32 %v413_v20, %v392_v8  ;;  %v414_v15 = vmul.f32 %v922_v39, %v488_v47  ;;  %v415_v17 = vmul.f32 %v922_v39, %v402_v13  ;;  %v404_v62 = vld [vmem:[#allocation2 + $0x82] sm:$0xff] }
  0x29   : > { %v478_v18 = vadd.f32 %v898_v28, %v449_v10  ;;  %v996_v31 = vadd.f32 %v986_v26, %v506_v27  ;;  %v364_v32 = vadd.f32 %v356_v9, %v335_v11  ;;  %v365_v22 = vadd.f32 %v357_v61, %v336_v37  ;;  %v490_v28 = vld [vmem:[#allocation2 + $0x72] sm:$0xff] }
  0x2a   : > { %v450_v24 = vadd.f32 %v442_v34, %v420_v38  ;;  %v451_v63 = vadd.f32 %v443_v46, %v421_v14  ;;  %v444_v3 = vmul.f32 %v927_v40, %v344_v7  ;;  %v445_v25 = vmul.f32 %v927_v40, %v432_v23 }
  0x2b   : > { %v507_v19 = vadd.f32 %v499_v4, %v478_v18  ;;  %v715_v20 = vmul.f32 -1.442695, %v996_v31  ;;  %v393_v47 = vadd.f32 %v934_v42, %v364_v32  ;;  %v394_v48 = vadd.f32 %v936_v43, %v365_v22 }
  0x2c   : > { %v479_v29 = vadd.f32 %v905_v33, %v450_v24  ;;  %v480_v30 = vadd.f32 %v913_v36, %v451_v63  ;;  %v502_v55 = vmul.f32 %v932_v41, %v402_v13  ;;  %v503_v34 = vmul.f32 %v932_v41, %v490_v28 }
  0x2d   : > { %v1008_v46 = vadd.f32 %v986_v26, %v507_v19  ;;  %778 = vpow2.f32 %v715_v20  ;;  %v422_v4 = vadd.f32 %v414_v15, %v393_v47  ;;  %v423_v57 = vadd.f32 %v415_v17, %v394_v48  ;;  %v463_v17 = vld [vmem:[#allocation2 + $0x91] sm:$0xff] }
  0x2e   : > { %v508_v56 = vadd.f32 %v500_v53, %v479_v29  ;;  %v509_v58 = vadd.f32 %v501_v54, %v480_v30  ;;  %v271_v42 = vmul.f32 %v863_v1, %v344_v7  ;;  %v272_v43 = vmul.f32 %v863_v1, %v432_v23  ;;  %v346_v54 = vld [vmem:[#allocation2 + $0x80] sm:$0xff] }
  0x2f   : > { %v716_v33 = vmul.f32 -1.442695, %v1008_v46  ;;  %v452_v59 = vadd.f32 %v444_v3, %v422_v4  ;;  %v453_v36 = vadd.f32 %v445_v25, %v423_v57  ;;  %v329_v60 = vmul.f32 %v878_v12, %v402_v13  ;;  %v492_v3 = vld [vmem:[#allocation2 + $0x92] sm:$0xff] }
  0x30   : > { %v1015_v0 = vadd.f32 %v986_v26, %v508_v56  ;;  %v1018_v2 = vadd.f32 %v986_v26, %v509_v58  ;;  %v308_v5 = vadd.f32 %v944_v49, %v271_v42  ;;  %v309_v53 = vadd.f32 %v946_v50, %v272_v43 }
  0x31   : > { %780 = vpow2.f32 %v716_v33  ;;  %v481_v1 = vadd.f32 %v939_v44, %v452_v59  ;;  %v482_v6 = vadd.f32 %v942_v45, %v453_v36  ;;  %v330_v7 = vmul.f32 %v878_v12, %v490_v28 }
  0x32   : > { %v717_v8 = vmul.f32 -1.442695, %v1015_v0  ;;  %v718_v9 = vmul.f32 -1.442695, %v1018_v2  ;;  %v337_v61 = vadd.f32 %v329_v60, %v308_v5  ;;  %v358_v10 = vmul.f32 %v910_v35, %v432_v23 }
  0x33   : > { %v510_v27 = vadd.f32 %v502_v55, %v481_v1  ;;  %v511_v49 = vadd.f32 %v503_v34, %v482_v6  ;;  %v338_v11 = vadd.f32 %v330_v7, %v309_v53  ;;  %v359_v50 = vmul.f32 %v910_v35, %v346_v54 }
  0x34   : > { %782 = vpow2.f32 %v717_v8  ;;  %v366_v37 = vadd.f32 %v358_v10, %v337_v61  ;;  %v416_v44 = vmul.f32 %v922_v39, %v490_v28  ;;  %v417_v45 = vmul.f32 %v922_v39, %v404_v62 }
  0x35   : > { %784 = vpow2.f32 %v718_v9  ;;  %v1032_v12 = vadd.f32 %v986_v26, %v510_v27  ;;  %v1035_v13 = vadd.f32 %v986_v26, %v511_v49  ;;  %v367_v38 = vadd.f32 %v359_v50, %v338_v11 }
  0x36   : > { %v395_v14 = vadd.f32 %v948_v51, %v366_v37  ;;  %v446_v15 = vmul.f32 %v927_v40, %v346_v54  ;;  %v447_v22 = vmul.f32 0.0, %v927_v40  ;;  %v475_v63 = vmul.f32 %v880_v16, %v888_v21 }
  0x37   : > { %v779_v35 = vpop.eup %778  ;;  %v719_v18 = vmul.f32 -1.442695, %v1032_v12  ;;  %v720_v32 = vmul.f32 -1.442695, %v1035_v13  ;;  %v396_v39 = vadd.f32 %v951_v52, %v367_v38  ;;  %v476_v25 = vmul.f32 %v888_v21, %v463_v17 }
  0x38   : > { %v553_v23 = vadd.f32 1.0, %v779_v35  ;;  %v424_v24 = vadd.f32 %v416_v44, %v395_v14  ;;  %v504_v20 = vmul.f32 %v932_v41, %v404_v62  ;;  %v505_v52 = vmul.f32 %v932_v41, %v492_v3 }
  0x39   : > { %786 = vpow2.f32 %v719_v18  ;;  %v425_v51 = vadd.f32 %v417_v45, %v396_v39 }
  0x3a   : > { %v454_v19 = vadd.f32 %v446_v15, %v424_v24  ;;  %788 = vpow2.f32 %v720_v32 }
  0x3b   : > { %v781_v47 = vpop.eup %780  ;;  %v455_v48 = vadd.f32 %v447_v22, %v425_v51  ;;  %790 = vrcp.f32 %v553_v23 }
  0x3c   : > { %v554_v28 = vadd.f32 1.0, %v781_v47  ;;  %v483_v40 = vadd.f32 %v475_v63, %v454_v19 }
  0x3d   : > { %v484_v29 = vadd.f32 %v476_v25, %v455_v48 }
  0x3e   : > { %v783_v30 = vpop.eup %782  ;;  %792 = vrcp.f32 %v554_v28  ;;  %v512_v16 = vadd.f32 %v504_v20, %v483_v40 }
  0x3f   : > { %v785_v55 = vpop.eup %784  ;;  %v555_v34 = vadd.f32 1.0, %v783_v30  ;;  %v513_v4 = vadd.f32 %v505_v52, %v484_v29 }
  0x40   : > { %v556_v57 = vadd.f32 1.0, %v785_v55  ;;  %v527_v21 = vadd.f32 %v986_v26, %v512_v16 }
  0x41   : > { %794 = vrcp.f32 %v555_v34  ;;  %v528_v56 = vadd.f32 %v986_v26, %v513_v4 }
  0x42   : > { %796 = vrcp.f32 %v556_v57  ;;  %v721_v58 = vmul.f32 -1.442695, %v527_v21 }
  0x43   : > { %v787_v41 = vpop.eup %786  ;;  %v722_v42 = vmul.f32 -1.442695, %v528_v56 }
  0x44   : > { %v557_v43 = vadd.f32 1.0, %v787_v41  ;;  %798 = vpow2.f32 %v721_v58  ;;  %v789_v33 = vpop.eup %788 }
  0x45   : > { %800 = vpow2.f32 %v722_v42  ;;  %v791_v59 = vpop.eup %790  ;;  %v558_v36 = vadd.f32 1.0, %v789_v33 }
  0x46   : > { %802 = vrcp.f32 %v557_v43  ;;  %v577_v5 = vmul.f32 %v791_v59, %v996_v31 }
  0x47   : > { %804 = vrcp.f32 %v558_v36 }
  0x48   : > { %v793_v60 = vpop.eup %792 }
  0x49   : > { %v578_v53 = vmul.f32 %v793_v60, %v1008_v46 }
  0x4b   : > { %v795_v26 = vpop.eup %794  ;;  %v746_v54 = vpack.c.bf16 %v578_v53, %v577_v5  ;;  %v601_v1 = vadd.f32 %v578_v53, %v577_v5 }
  0x4c   : > { %v797_v6 = vpop.eup %796  ;;  %v579_v7 = vmul.f32 %v795_v26, %v1015_v0 }
  0x4d   : > { %747 = vst [vmem:[%s1057_s21] sm:$0xff] %v746_v54   ;;  %v580_v62 = vmul.f32 %v797_v6, %v1018_v2 }
  0x4e   : > { %v799_v31 = vpop.eup %798  ;;  %v602_v46 = vadd.f32 %v601_v1, %v579_v7 }
  0x4f   : > { %v801_v8 = vpop.eup %800  ;;  %v751_v9 = vpack.c.bf16 %v580_v62, %v579_v7  ;;  %v559_v61 = vadd.f32 1.0, %v799_v31 }
  0x50   : > { %v803_v10 = vpop.eup %802  ;;  %v560_v27 = vadd.f32 1.0, %v801_v8  ;;  %v603_v50 = vadd.f32 %v602_v46, %v580_v62 }
  0x51   : > { %766 = vst [vmem:[%s1057_s21 + $0x8] sm:$0xff] %v751_v9   ;;  %v581_v49 = vmul.f32 %v803_v10, %v1032_v12  ;;  %806 = vrcp.f32 %v559_v61  ;;  %v805_v11 = vpop.eup %804 }
  0x52   : > { %808 = vrcp.f32 %v560_v27  ;;  %v582_v0 = vmul.f32 %v805_v11, %v1035_v13 }
  0x53   : > { %v604_v2 = vadd.f32 %v603_v50, %v581_v49 }
  0x54   : > { %v756_v37 = vpack.c.bf16 %v582_v0, %v581_v49 }
  0x55   : > { %v605_v44 = vadd.f32 %v604_v2, %v582_v0 }
  0x56   : > { %767 = vst [vmem:[%s1057_s21 + $0x10] sm:$0xff] %v756_v37  }
  0x5b   : > { %v807_v45 = vpop.eup %806 }
  0x5c   : > { %v809_v38 = vpop.eup %808  ;;  %v583_v14 = vmul.f32 %v807_v45, %v527_v21 }
  0x5d   : > { %v584_v15 = vmul.f32 %v809_v38, %v528_v56 }
  0x5e   : > { %v606_v17 = vadd.f32 %v605_v44, %v583_v14 }
  0x5f   : > { %v761_v35 = vpack.c.bf16 %v584_v15, %v583_v14 }
  0x60   : > { %v607_v18 = vadd.f32 %v606_v17, %v584_v15 }
  0x61   : > { %768 = vst [vmem:[%s1057_s21 + $0x18] sm:$0xff] %v761_v35  }
  0x62   : > { %v608_v12 = vrot.slane %v607_v18, 4 }
  0x64   : > { %v609_v32 = vadd.f32 %v608_v12, %v607_v18 }
  0x66   : > { %v610_v39 = vrot.slane %v609_v32, 2 }
  0x68   : > { %v611_v22 = vadd.f32 %v610_v39, %v609_v32 }
  0x6a   : > { %v612_v23 = vrot.slane %v611_v22, 1 }
  0x6c   : > { %v613_v24 = vadd.f32 %v612_v23, %v611_v22 }
  0x6e   : > { %v614_v13 = vmul.f32 0.015625, %v613_v24 }
  0x70   : > { %615 = vst [vmem:[%s206_s23] sm:$0x1] %v614_v13 }
  0x71 PF: > { %s15_s15 = sadd.s32 1, %s816_s15  }
  0x72   : > { %p12_p4 = scmp.ge.s32.totalorder %s15_s15, 4  }
  0x74   :  { %14 = sbr.rel (!%p12_p4) target bundleno = 1 (0x1), region = 76 }

// kernel: effinet_forward.9
= control target key start
LH: loop header
LB: loop body
LE: loop exit
PB: predicated region body
PF: predicated region fallthrough
CT: control target
= control target key end

     0   :  { %s876_s1 = inlined_call_operand.vmem [shape: bf16[128,128], index: 1, kind: input, shape index: {}]   ;;  %s877_s0 = inlined_call_operand.vmem [shape: bf16[128,128], index: 0, kind: input, shape index: {}]   ;;  %s878_s2 = inlined_call_operand.vmem [shape: f32[1,128], index: 2, kind: input, shape index: {}]   ;;  %s879_s3 = inlined_call_operand.vmem [shape: bf16[128,128], index: 3, kind: output, shape index: {}]  }
   0x1   :  { %v619_v0 = vld [vmem:[%s876_s1] sm:$0xff]   ;;  %v620_v1 = vld [vmem:[%s876_s1 + $0x8] sm:$0xff]   ;;  %v621_v2 = vld [vmem:[%s876_s1 + $0x10] sm:$0xff]  }
   0x2   :  { %571 = vmatprep.subr.bf16.mxu0 %v619_v0  ;;  %603 = vmatprep.subr.bf16.mxu1 %v619_v0  ;;  %v622_v3 = vld [vmem:[%s876_s1 + $0x18] sm:$0xff]   ;;  %v627_v4 = vld [vmem:[%s877_s0] sm:$0xff]   ;;  %v624_v7 = vld [vmem:[%s876_s1 + $0x28] sm:$0xff]  }
   0x3   :  { %572 = vmatpush3.bf16.msra.mxu0 %v619_v0  ;;  %611 = vmatpush3.bf16.msra.mxu1 %v619_v0  ;;  %v628_v5 = vld [vmem:[%s877_s0 + $0x20] sm:$0xff]   ;;  %v625_v8 = vld [vmem:[%s876_s1 + $0x30] sm:$0xff]   ;;  %v626_v9 = vld [vmem:[%s876_s1 + $0x38] sm:$0xff]  }
   0x4   :  { %573 = vmatprep.subr.bf16.mxu0 %v620_v1  ;;  %604 = vmatprep.subr.bf16.mxu1 %v620_v1  ;;  %v623_v6 = vld [vmem:[%s876_s1 + $0x20] sm:$0xff]   ;;  %v629_v10 = vld [vmem:[%s877_s0 + $0x8] sm:$0xff]   ;;  %v631_v12 = vld [vmem:[%s877_s0 + $0x10] sm:$0xff]  }
   0x5   :  { %587 = vmatprep.mubr.bf16.mxu0 %v627_v4  ;;  %595 = vmatprep.mubr.bf16.mxu1 %v628_v5  ;;  %v630_v11 = vld [vmem:[%s877_s0 + $0x28] sm:$0xff]   ;;  %v632_v13 = vld [vmem:[%s877_s0 + $0x30] sm:$0xff]   ;;  %v633_v14 = vld [vmem:[%s877_s0 + $0x18] sm:$0xff]  }
   0x6   :  { %v634_v15 = vld [vmem:[%s877_s0 + $0x38] sm:$0xff]   ;;  %v770_v16 = vld [vmem:[%s878_s2] ss:$0 sm:$0xff] }
   0x7   :  { %574 = vmatpush3.bf16.msra.mxu0 %v620_v1  ;;  %612 = vmatpush3.bf16.msra.mxu1 %v620_v1 }
   0x8   :  { %575 = vmatprep.subr.bf16.mxu0 %v621_v2  ;;  %605 = vmatprep.subr.bf16.mxu1 %v621_v2 }
   0xb   :  { %576 = vmatpush3.bf16.msra.mxu0 %v621_v2  ;;  %613 = vmatpush3.bf16.msra.mxu1 %v621_v2 }
   0xc   :  { %577 = vmatprep.subr.bf16.mxu0 %v622_v3  ;;  %606 = vmatprep.subr.bf16.mxu1 %v622_v3 }
   0xf   :  { %578 = vmatpush3.bf16.msra.mxu0 %v622_v3  ;;  %614 = vmatpush3.bf16.msra.mxu1 %v622_v3 }
  0x10   :  { %579 = vmatprep.subr.bf16.mxu0 %v623_v6  ;;  %607 = vmatprep.subr.bf16.mxu1 %v623_v6 }
  0x13   :  { %580 = vmatpush3.bf16.msra.mxu0 %v623_v6  ;;  %615 = vmatpush3.bf16.msra.mxu1 %v623_v6 }
  0x14   :  { %581 = vmatprep.subr.bf16.mxu0 %v624_v7  ;;  %608 = vmatprep.subr.bf16.mxu1 %v624_v7 }
  0x17   :  { %582 = vmatpush3.bf16.msra.mxu0 %v624_v7  ;;  %616 = vmatpush3.bf16.msra.mxu1 %v624_v7 }
  0x18   :  { %583 = vmatprep.subr.bf16.mxu0 %v625_v8  ;;  %609 = vmatprep.subr.bf16.mxu1 %v625_v8 }
  0x1b   :  { %584 = vmatpush3.bf16.msra.mxu0 %v625_v8  ;;  %617 = vmatpush3.bf16.msra.mxu1 %v625_v8 }
  0x1c   :  { %585 = vmatprep.subr.bf16.mxu0 %v626_v9  ;;  %610 = vmatprep.subr.bf16.mxu1 %v626_v9 }
  0x1f   :  { %586 = vmatpush3.bf16.msra.mxu0 %v626_v9  ;;  %618 = vmatpush3.bf16.msra.mxu1 %v626_v9 }
  0x22   :  { %588 = vmatmul.mubr.bf16.vlgmr.msra.gmra.mrb[0].mxu0 %v629_v10  ;;  %596 = vmatmul.mubr.bf16.vlgmr.msra.gmra.mrb[0].mxu1 %v630_v11 }
  0x23   :  { %591 = vmatprep.mubr.bf16.mxu0 %v631_v12  ;;  %599 = vmatprep.mubr.bf16.mxu1 %v632_v13 }
  0x2a   :  { %592 = vmatmul.mubr.bf16.gmra.mrb[4].mxu0 %v633_v14  ;;  %600 = vmatmul.mubr.bf16.gmra.mrb[4].mxu1 %v634_v15 }
  0xf5   :  { %v589_v17 = vpop.f32.mrb[0].mxu0  ;;  %v597_v18 = vpop.f32.mrb[0].mxu1 }
  0xf6   :  { %v773_v19 = vadd.f32 %v589_v17, %v770_v16  ;;  %v776_v20 = vadd.f32 %v597_v18, %v770_v16  ;;  %v184_v21 = vpop.f32.mrb[1].mxu0  ;;  %v216_v22 = vpop.f32.mrb[1].mxu1 }
  0xf7   :  { %v779_v23 = vadd.f32 %v770_v16, %v184_v21  ;;  %v782_v24 = vadd.f32 %v770_v16, %v216_v22  ;;  %v590_v25 = vpop.f32.mrb[2].mxu0  ;;  %v598_v26 = vpop.f32.mrb[2].mxu1 }
  0xf8   :  { %v462_v27 = vmul.f32 -1.442695, %v773_v19  ;;  %v470_v28 = vmul.f32 -1.442695, %v776_v20  ;;  %v787_v29 = vadd.f32 %v590_v25, %v770_v16  ;;  %v790_v30 = vadd.f32 %v598_v26, %v770_v16  ;;  %v187_v31 = vpop.f32.mrb[3].mxu0  ;;  %v219_v32 = vpop.f32.mrb[3].mxu1 }
  0xf9   :  { %v460_v33 = vmul.f32 -1.442695, %v779_v23  ;;  %v468_v34 = vmul.f32 -1.442695, %v782_v24  ;;  %v795_v35 = vadd.f32 %v770_v16, %v187_v31  ;;  %v798_v36 = vadd.f32 %v770_v16, %v219_v32 }
  0xfa   :  { %635 = vpow2.f32 %v462_v27  ;;  %v463_v37 = vmul.f32 -1.442695, %v787_v29  ;;  %v471_v38 = vmul.f32 -1.442695, %v790_v30 }
  0xfb   :  { %637 = vpow2.f32 %v470_v28  ;;  %v461_v39 = vmul.f32 -1.442695, %v795_v35  ;;  %v469_v40 = vmul.f32 -1.442695, %v798_v36 }
  0xfc   :  { %639 = vpow2.f32 %v460_v33 }
  0xfd   :  { %641 = vpow2.f32 %v468_v34  ;;  %v593_v41 = vpop.f32.mrb[4].mxu0  ;;  %v601_v42 = vpop.f32.mrb[4].mxu1 }
  0xfe   :  { %643 = vpow2.f32 %v463_v37  ;;  %v805_v43 = vadd.f32 %v593_v41, %v770_v16  ;;  %v808_v44 = vadd.f32 %v601_v42, %v770_v16  ;;  %v200_v45 = vpop.f32.mrb[5].mxu0  ;;  %v232_v46 = vpop.f32.mrb[5].mxu1 }
  0xff   :  { %645 = vpow2.f32 %v471_v38  ;;  %v811_v47 = vadd.f32 %v770_v16, %v200_v45  ;;  %v594_v48 = vpop.f32.mrb[6].mxu0  ;;  %v602_v49 = vpop.f32.mrb[6].mxu1  ;;  %v821_v0 = vadd.f32 %v770_v16, %v232_v46 }
 0x100   :  { %647 = vpow2.f32 %v461_v39  ;;  %v466_v50 = vmul.f32 -1.442695, %v805_v43  ;;  %v474_v51 = vmul.f32 -1.442695, %v808_v44  ;;  %v816_v52 = vadd.f32 %v594_v48, %v770_v16  ;;  %v203_v53 = vpop.f32.mrb[7].mxu0  ;;  %v235_v54 = vpop.f32.mrb[7].mxu1 }
 0x101   :  { %649 = vpow2.f32 %v469_v40  ;;  %v464_v55 = vmul.f32 -1.442695, %v811_v47  ;;  %v472_v9 = vmul.f32 -1.442695, %v821_v0  ;;  %v825_v12 = vadd.f32 %v602_v49, %v770_v16 }
 0x102   :  { %651 = vpow2.f32 %v466_v50  ;;  %v467_v56 = vmul.f32 -1.442695, %v816_v52  ;;  %v828_v14 = vadd.f32 %v770_v16, %v203_v53  ;;  %v831_v17 = vadd.f32 %v770_v16, %v235_v54 }
 0x103   :  { %653 = vpow2.f32 %v474_v51  ;;  %v475_v22 = vmul.f32 -1.442695, %v825_v12 }
 0x104   :  { %v636_v57 = vpop.eup %635  ;;  %655 = vpow2.f32 %v464_v55  ;;  %v465_v27 = vmul.f32 -1.442695, %v828_v14  ;;  %v473_v31 = vmul.f32 -1.442695, %v831_v17 }
 0x105   :  { %v638_v58 = vpop.eup %637  ;;  %v297_v59 = vadd.f32 1.0, %v636_v57  ;;  %657 = vpow2.f32 %v467_v56 }
 0x106   :  { %v640_v60 = vpop.eup %639  ;;  %v305_v61 = vadd.f32 1.0, %v638_v58 }
 0x107   :  { %v642_v62 = vpop.eup %641  ;;  %659 = vrcp.f32 %v297_v59  ;;  %v295_v63 = vadd.f32 1.0, %v640_v60 }
 0x108   :  { %v644_v1 = vpop.eup %643  ;;  %661 = vrcp.f32 %v305_v61  ;;  %v303_v2 = vadd.f32 1.0, %v642_v62 }
 0x109   :  { %v646_v3 = vpop.eup %645  ;;  %663 = vrcp.f32 %v295_v63  ;;  %v298_v4 = vadd.f32 1.0, %v644_v1 }
 0x10a   :  { %v648_v5 = vpop.eup %647  ;;  %665 = vrcp.f32 %v303_v2  ;;  %v306_v6 = vadd.f32 1.0, %v646_v3 }
 0x10b   :  { %v650_v7 = vpop.eup %649  ;;  %667 = vrcp.f32 %v298_v4  ;;  %v296_v8 = vadd.f32 1.0, %v648_v5 }
 0x10c   :  { %v652_v10 = vpop.eup %651  ;;  %669 = vrcp.f32 %v306_v6  ;;  %v304_v11 = vadd.f32 1.0, %v650_v7 }
 0x10d   :  { %671 = vrcp.f32 %v296_v8  ;;  %v301_v13 = vadd.f32 1.0, %v652_v10  ;;  %v654_v15 = vpop.eup %653 }
 0x10e   :  { %673 = vrcp.f32 %v304_v11  ;;  %v656_v18 = vpop.eup %655 }
 0x10f   :  { %675 = vpow2.f32 %v472_v9  ;;  %v658_v21 = vpop.eup %657 }
 0x110   :  { %677 = vrcp.f32 %v301_v13  ;;  %v302_v26 = vadd.f32 1.0, %v658_v21 }
 0x111   :  { %v660_v25 = vpop.eup %659 }
 0x112   :  { %v662_v28 = vpop.eup %661  ;;  %679 = vrcp.f32 %v302_v26  ;;  %v345_v37 = vmul.f32 %v660_v25, %v773_v19 }
 0x113   :  { %v664_v32 = vpop.eup %663  ;;  %681 = vpow2.f32 %v475_v22  ;;  %v353_v40 = vmul.f32 %v662_v28, %v776_v20  ;;  %v309_v20 = vadd.f32 1.0, %v654_v15 }
 0x114   :  { %v666_v33 = vpop.eup %665  ;;  %683 = vpow2.f32 %v465_v27  ;;  %v343_v45 = vmul.f32 %v664_v32, %v779_v23 }
 0x115   :  { %v668_v34 = vpop.eup %667  ;;  %685 = vpow2.f32 %v473_v31  ;;  %v351_v50 = vmul.f32 %v666_v33, %v782_v24 }
 0x116   :  { %v670_v16 = vpop.eup %669  ;;  %v346_v38 = vmul.f32 %v668_v34, %v787_v29  ;;  %687 = vrcp.f32 %v309_v20 }
 0x117   :  { %v672_v39 = vpop.eup %671  ;;  %v354_v41 = vmul.f32 %v670_v16, %v790_v30  ;;  %v299_v30 = vadd.f32 1.0, %v656_v18 }
 0x118   :  { %v674_v42 = vpop.eup %673  ;;  %v516_v46 = vpack.c.bf16 %v346_v38, %v345_v37  ;;  %v344_v48 = vmul.f32 %v672_v39, %v795_v35 }
 0x119   :  { %v676_v49 = vpop.eup %675  ;;  %v536_v51 = vpack.c.bf16 %v354_v41, %v353_v40  ;;  %v352_v19 = vmul.f32 %v674_v42, %v798_v36  ;;  %689 = vrcp.f32 %v299_v30 }
 0x11a   :  { %548 = vst [vmem:[%s879_s3 + $0x8] sm:$0xff] %v516_v46   ;;  %v511_v29 = vpack.c.bf16 %v344_v48, %v343_v45  ;;  %v678_v53 = vpop.eup %677  ;;  %v307_v24 = vadd.f32 1.0, %v676_v49 }
 0x11b   :  { %552 = vst [vmem:[%s879_s3 + $0x28] sm:$0xff] %v536_v51   ;;  %v531_v23 = vpack.c.bf16 %v352_v19, %v351_v50  ;;  %v349_v54 = vmul.f32 %v678_v53, %v805_v43 }
 0x11c   :  { %512 = vst [vmem:[%s879_s3] sm:$0xff] %v511_v29   ;;  %v680_v35 = vpop.eup %679  ;;  %691 = vrcp.f32 %v307_v24 }
 0x11d   :  { %551 = vst [vmem:[%s879_s3 + $0x20] sm:$0xff] %v531_v23   ;;  %v682_v36 = vpop.eup %681  ;;  %v350_v55 = vmul.f32 %v680_v35, %v816_v52 }
 0x11e   :  { %v684_v56 = vpop.eup %683  ;;  %v310_v57 = vadd.f32 1.0, %v682_v36 }
 0x11f   :  { %v686_v58 = vpop.eup %685  ;;  %v526_v59 = vpack.c.bf16 %v350_v55, %v349_v54  ;;  %v300_v60 = vadd.f32 1.0, %v684_v56 }
 0x120   :  { %693 = vrcp.f32 %v310_v57  ;;  %v308_v61 = vadd.f32 1.0, %v686_v58  ;;  %v688_v62 = vpop.eup %687 }
 0x121   :  { %550 = vst [vmem:[%s879_s3 + $0x18] sm:$0xff] %v526_v59   ;;  %695 = vrcp.f32 %v300_v60  ;;  %v357_v2 = vmul.f32 %v688_v62, %v808_v44 }
 0x122   :  { %697 = vrcp.f32 %v308_v61 }
 0x123   :  { %v690_v43 = vpop.eup %689 }
 0x124   :  { %v347_v5 = vmul.f32 %v690_v43, %v811_v47 }
 0x126   :  { %v692_v63 = vpop.eup %691 }
 0x127   :  { %v355_v7 = vmul.f32 %v692_v63, %v821_v0 }
 0x12a   :  { %v694_v1 = vpop.eup %693 }
 0x12b   :  { %v696_v52 = vpop.eup %695  ;;  %v358_v3 = vmul.f32 %v694_v1, %v825_v12 }
 0x12c   :  { %v698_v4 = vpop.eup %697  ;;  %v348_v6 = vmul.f32 %v696_v52, %v828_v14 }
 0x12d   :  { %v546_v8 = vpack.c.bf16 %v358_v3, %v357_v2  ;;  %v356_v9 = vmul.f32 %v698_v4, %v831_v17 }
 0x12e   :  { %v521_v10 = vpack.c.bf16 %v348_v6, %v347_v5 }
 0x12f   :  { %554 = vst [vmem:[%s879_s3 + $0x38] sm:$0xff] %v546_v8   ;;  %v541_v11 = vpack.c.bf16 %v356_v9, %v355_v7 }
 0x130   :  { %549 = vst [vmem:[%s879_s3 + $0x10] sm:$0xff] %v521_v10  }
 0x131   :  { %553 = vst [vmem:[%s879_s3 + $0x30] sm:$0xff] %v541_v11  }

// kernel: effinet_forward.8
= control target key start
LH: loop header
LB: loop body
LE: loop exit
PB: predicated region body
PF: predicated region fallthrough
CT: control target
= control target key end

     0   :  { %vm118_vm0 = vcmask 1044480   ;;  %vm119_vm1 = vcmask 1045504   ;;  %vm93_vm2 = vcmask 220160   ;;  %v641_v1 = vmov 65535   ;;  %s809_s1 = inlined_call_operand.vmem [shape: bf16[27,128], index: 1, kind: input, shape index: {}]   ;;  %s810_s0 = inlined_call_operand.vmem [shape: bf16[128,27], index: 0, kind: input, shape index: {}]   ;;  %s811_s2 = inlined_call_operand.vmem [shape: f32[1,128], index: 2, kind: input, shape index: {}]   ;;  %s812_s3 = inlined_call_operand.vmem [shape: bf16[128,128], index: 3, kind: output, shape index: {}]  }
   0x1   :  { %v567_v0 = vld [vmem:[%s809_s1] sm:$0xff]   ;;  %v120_v2 = vsel %vm118_vm0, 4294967295, %v641_v1  ;;  %v568_v3 = vld [vmem:[%s809_s1 + $0x8] sm:$0x3f]   ;;  %v573_v10 = vld [vmem:[%s810_s0 + $0x10] sm:$0xff]  }
   0x2   :  { %542 = vmatprep.subr.bf16.mxu0 %v567_v0  ;;  %562 = vmatprep.subr.bf16.mxu1 %v567_v0  ;;  %v121_v4 = vsel %vm119_vm1, %v120_v2, 0  ;;  %v569_v5 = vld [vmem:[%s810_s0] sm:$0xff]   ;;  %v571_v8 = vld [vmem:[%s810_s0 + $0x8] sm:$0xff]   ;;  %v574_v11 = vld [vmem:[%s810_s0 + $0x30] sm:$0xff]  }
   0x3   :  { %543 = vmatpush3.bf16.msra.mxu0 %v567_v0  ;;  %564 = vmatpush3.bf16.msra.mxu1 %v567_v0  ;;  %v123_v6 = vand.u32 %v568_v3, %v121_v4  ;;  %v570_v7 = vld [vmem:[%s810_s0 + $0x20] sm:$0xff]   ;;  %v572_v9 = vld [vmem:[%s810_s0 + $0x28] sm:$0xff]   ;;  %v575_v12 = vld [vmem:[%s810_s0 + $0x18] sm:$0xff]  }
   0x4   :  { %546 = vmatprep.mubr.msk.bf16.mxu0 %vm93_vm2, %v569_v5  ;;  %554 = vmatprep.mubr.msk.bf16.mxu1 %vm93_vm2, %v570_v7  ;;  %v576_v13 = vld [vmem:[%s810_s0 + $0x38] sm:$0xff]   ;;  %v703_v14 = vld [vmem:[%s811_s2] ss:$0 sm:$0xff] }
   0x5   :  { %544 = vmatprep.subr.bf16.mxu0 %v123_v6  ;;  %563 = vmatprep.subr.bf16.mxu1 %v123_v6 }
   0x7   :  { %545 = vmatpush3.bf16.msra.mxu0 %v123_v6  ;;  %565 = vmatpush3.bf16.msra.mxu1 %v123_v6 }
   0xa   :  { %547 = vmatmul.mubr.msk.bf16.vlgmr.msra.gmra.mrb[0].mxu0 %vm93_vm2, %v571_v8  ;;  %555 = vmatmul.mubr.msk.bf16.vlgmr.msra.gmra.mrb[0].mxu1 %vm93_vm2, %v572_v9 }
   0xb   :  { %550 = vmatprep.mubr.msk.bf16.mxu0 %vm93_vm2, %v573_v10  ;;  %558 = vmatprep.mubr.msk.bf16.mxu1 %vm93_vm2, %v574_v11 }
  0x12   :  { %551 = vmatmul.mubr.msk.bf16.gmra.mrb[4].mxu0 %vm93_vm2, %v575_v12  ;;  %559 = vmatmul.mubr.msk.bf16.gmra.mrb[4].mxu1 %vm93_vm2, %v576_v13 }
  0xdd   :  { %v548_v15 = vpop.f32.mrb[0].mxu0  ;;  %v556_v16 = vpop.f32.mrb[0].mxu1 }
  0xde   :  { %v706_v17 = vadd.f32 %v548_v15, %v703_v14  ;;  %v709_v18 = vadd.f32 %v556_v16, %v703_v14  ;;  %v159_v19 = vpop.f32.mrb[1].mxu0  ;;  %v191_v20 = vpop.f32.mrb[1].mxu1 }
  0xdf   :  { %v712_v21 = vadd.f32 %v703_v14, %v159_v19  ;;  %v715_v22 = vadd.f32 %v703_v14, %v191_v20  ;;  %v549_v23 = vpop.f32.mrb[2].mxu0  ;;  %v557_v24 = vpop.f32.mrb[2].mxu1 }
  0xe0   :  { %v439_v25 = vmul.f32 -1.442695, %v706_v17  ;;  %v447_v26 = vmul.f32 -1.442695, %v709_v18  ;;  %v720_v27 = vadd.f32 %v549_v23, %v703_v14  ;;  %v723_v28 = vadd.f32 %v557_v24, %v703_v14  ;;  %v162_v29 = vpop.f32.mrb[3].mxu0  ;;  %v194_v30 = vpop.f32.mrb[3].mxu1 }
  0xe1   :  { %v437_v31 = vmul.f32 -1.442695, %v712_v21  ;;  %v445_v32 = vmul.f32 -1.442695, %v715_v22  ;;  %v728_v33 = vadd.f32 %v703_v14, %v162_v29  ;;  %v731_v34 = vadd.f32 %v703_v14, %v194_v30 }
  0xe2   :  { %577 = vpow2.f32 %v439_v25  ;;  %v440_v35 = vmul.f32 -1.442695, %v720_v27  ;;  %v448_v36 = vmul.f32 -1.442695, %v723_v28 }
  0xe3   :  { %579 = vpow2.f32 %v447_v26  ;;  %v438_v37 = vmul.f32 -1.442695, %v728_v33  ;;  %v446_v38 = vmul.f32 -1.442695, %v731_v34 }
  0xe4   :  { %581 = vpow2.f32 %v437_v31 }
  0xe5   :  { %583 = vpow2.f32 %v445_v32  ;;  %v552_v39 = vpop.f32.mrb[4].mxu0  ;;  %v560_v40 = vpop.f32.mrb[4].mxu1 }
  0xe6   :  { %585 = vpow2.f32 %v440_v35  ;;  %v738_v41 = vadd.f32 %v552_v39, %v703_v14  ;;  %v741_v42 = vadd.f32 %v560_v40, %v703_v14  ;;  %v175_v43 = vpop.f32.mrb[5].mxu0  ;;  %v207_v44 = vpop.f32.mrb[5].mxu1 }
  0xe7   :  { %587 = vpow2.f32 %v448_v36  ;;  %v744_v45 = vadd.f32 %v703_v14, %v175_v43  ;;  %v553_v46 = vpop.f32.mrb[6].mxu0  ;;  %v561_v47 = vpop.f32.mrb[6].mxu1  ;;  %v754_v62 = vadd.f32 %v703_v14, %v207_v44 }
  0xe8   :  { %589 = vpow2.f32 %v438_v37  ;;  %v443_v48 = vmul.f32 -1.442695, %v738_v41  ;;  %v451_v49 = vmul.f32 -1.442695, %v741_v42  ;;  %v749_v50 = vadd.f32 %v553_v46, %v703_v14  ;;  %v178_v51 = vpop.f32.mrb[7].mxu0  ;;  %v210_v52 = vpop.f32.mrb[7].mxu1 }
  0xe9   :  { %591 = vpow2.f32 %v446_v38  ;;  %v441_v53 = vmul.f32 -1.442695, %v744_v45  ;;  %v449_v7 = vmul.f32 -1.442695, %v754_v62  ;;  %v758_v10 = vadd.f32 %v561_v47, %v703_v14 }
  0xea   :  { %593 = vpow2.f32 %v443_v48  ;;  %v444_v54 = vmul.f32 -1.442695, %v749_v50  ;;  %v761_v12 = vadd.f32 %v703_v14, %v178_v51  ;;  %v764_v15 = vadd.f32 %v703_v14, %v210_v52 }
  0xeb   :  { %595 = vpow2.f32 %v451_v49  ;;  %v452_v20 = vmul.f32 -1.442695, %v758_v10 }
  0xec   :  { %v578_v55 = vpop.eup %577  ;;  %597 = vpow2.f32 %v441_v53  ;;  %v442_v25 = vmul.f32 -1.442695, %v761_v12  ;;  %v450_v29 = vmul.f32 -1.442695, %v764_v15 }
  0xed   :  { %v580_v56 = vpop.eup %579  ;;  %v272_v57 = vadd.f32 1.0, %v578_v55  ;;  %599 = vpow2.f32 %v444_v54 }
  0xee   :  { %v582_v58 = vpop.eup %581  ;;  %v280_v59 = vadd.f32 1.0, %v580_v56 }
  0xef   :  { %v584_v60 = vpop.eup %583  ;;  %601 = vrcp.f32 %v272_v57  ;;  %v270_v61 = vadd.f32 1.0, %v582_v58 }
  0xf0   :  { %v586_v63 = vpop.eup %585  ;;  %603 = vrcp.f32 %v280_v59  ;;  %v278_v0 = vadd.f32 1.0, %v584_v60 }
  0xf1   :  { %v588_v1 = vpop.eup %587  ;;  %605 = vrcp.f32 %v270_v61  ;;  %v273_v2 = vadd.f32 1.0, %v586_v63 }
  0xf2   :  { %v590_v3 = vpop.eup %589  ;;  %607 = vrcp.f32 %v278_v0  ;;  %v281_v4 = vadd.f32 1.0, %v588_v1 }
  0xf3   :  { %v592_v5 = vpop.eup %591  ;;  %609 = vrcp.f32 %v273_v2  ;;  %v271_v6 = vadd.f32 1.0, %v590_v3 }
  0xf4   :  { %v594_v8 = vpop.eup %593  ;;  %611 = vrcp.f32 %v281_v4  ;;  %v279_v9 = vadd.f32 1.0, %v592_v5 }
  0xf5   :  { %613 = vrcp.f32 %v271_v6  ;;  %v276_v11 = vadd.f32 1.0, %v594_v8  ;;  %v596_v13 = vpop.eup %595 }
  0xf6   :  { %615 = vrcp.f32 %v279_v9  ;;  %v598_v16 = vpop.eup %597 }
  0xf7   :  { %617 = vpow2.f32 %v449_v7  ;;  %v600_v19 = vpop.eup %599 }
  0xf8   :  { %619 = vrcp.f32 %v276_v11  ;;  %v277_v24 = vadd.f32 1.0, %v600_v19 }
  0xf9   :  { %v602_v23 = vpop.eup %601 }
  0xfa   :  { %v604_v26 = vpop.eup %603  ;;  %621 = vrcp.f32 %v277_v24  ;;  %v320_v35 = vmul.f32 %v602_v23, %v706_v17 }
  0xfb   :  { %v606_v30 = vpop.eup %605  ;;  %623 = vpow2.f32 %v452_v20  ;;  %v328_v38 = vmul.f32 %v604_v26, %v709_v18  ;;  %v284_v18 = vadd.f32 1.0, %v596_v13 }
  0xfc   :  { %v608_v31 = vpop.eup %607  ;;  %625 = vpow2.f32 %v442_v25  ;;  %v318_v43 = vmul.f32 %v606_v30, %v712_v21 }
  0xfd   :  { %v610_v32 = vpop.eup %609  ;;  %627 = vpow2.f32 %v450_v29  ;;  %v326_v48 = vmul.f32 %v608_v31, %v715_v22 }
  0xfe   :  { %v612_v14 = vpop.eup %611  ;;  %v321_v36 = vmul.f32 %v610_v32, %v720_v27  ;;  %629 = vrcp.f32 %v284_v18 }
  0xff   :  { %v614_v37 = vpop.eup %613  ;;  %v329_v39 = vmul.f32 %v612_v14, %v723_v28  ;;  %v274_v28 = vadd.f32 1.0, %v598_v16 }
 0x100   :  { %v616_v40 = vpop.eup %615  ;;  %v493_v44 = vpack.c.bf16 %v321_v36, %v320_v35  ;;  %v319_v46 = vmul.f32 %v614_v37, %v728_v33 }
 0x101   :  { %v618_v47 = vpop.eup %617  ;;  %v513_v49 = vpack.c.bf16 %v329_v39, %v328_v38  ;;  %v327_v17 = vmul.f32 %v616_v40, %v731_v34  ;;  %631 = vrcp.f32 %v274_v28 }
 0x102   :  { %525 = vst [vmem:[%s812_s3 + $0x8] sm:$0xff] %v493_v44   ;;  %v488_v27 = vpack.c.bf16 %v319_v46, %v318_v43  ;;  %v620_v51 = vpop.eup %619  ;;  %v282_v22 = vadd.f32 1.0, %v618_v47 }
 0x103   :  { %529 = vst [vmem:[%s812_s3 + $0x28] sm:$0xff] %v513_v49   ;;  %v508_v21 = vpack.c.bf16 %v327_v17, %v326_v48  ;;  %v324_v52 = vmul.f32 %v620_v51, %v738_v41 }
 0x104   :  { %489 = vst [vmem:[%s812_s3] sm:$0xff] %v488_v27   ;;  %v622_v33 = vpop.eup %621  ;;  %633 = vrcp.f32 %v282_v22 }
 0x105   :  { %528 = vst [vmem:[%s812_s3 + $0x20] sm:$0xff] %v508_v21   ;;  %v624_v34 = vpop.eup %623  ;;  %v325_v53 = vmul.f32 %v622_v33, %v749_v50 }
 0x106   :  { %v626_v54 = vpop.eup %625  ;;  %v285_v55 = vadd.f32 1.0, %v624_v34 }
 0x107   :  { %v628_v56 = vpop.eup %627  ;;  %v503_v57 = vpack.c.bf16 %v325_v53, %v324_v52  ;;  %v275_v58 = vadd.f32 1.0, %v626_v54 }
 0x108   :  { %635 = vrcp.f32 %v285_v55  ;;  %v283_v59 = vadd.f32 1.0, %v628_v56  ;;  %v630_v60 = vpop.eup %629 }
 0x109   :  { %527 = vst [vmem:[%s812_s3 + $0x18] sm:$0xff] %v503_v57   ;;  %637 = vrcp.f32 %v275_v58  ;;  %v332_v0 = vmul.f32 %v630_v60, %v741_v42 }
 0x10a   :  { %639 = vrcp.f32 %v283_v59 }
 0x10b   :  { %v632_v41 = vpop.eup %631 }
 0x10c   :  { %v322_v3 = vmul.f32 %v632_v41, %v744_v45 }
 0x10e   :  { %v634_v61 = vpop.eup %633 }
 0x10f   :  { %v330_v5 = vmul.f32 %v634_v61, %v754_v62 }
 0x112   :  { %v636_v63 = vpop.eup %635 }
 0x113   :  { %v638_v50 = vpop.eup %637  ;;  %v333_v1 = vmul.f32 %v636_v63, %v758_v10 }
 0x114   :  { %v640_v2 = vpop.eup %639  ;;  %v323_v4 = vmul.f32 %v638_v50, %v761_v12 }
 0x115   :  { %v523_v6 = vpack.c.bf16 %v333_v1, %v332_v0  ;;  %v331_v7 = vmul.f32 %v640_v2, %v764_v15 }
 0x116   :  { %v498_v8 = vpack.c.bf16 %v323_v4, %v322_v3 }
 0x117   :  { %531 = vst [vmem:[%s812_s3 + $0x38] sm:$0xff] %v523_v6   ;;  %v518_v9 = vpack.c.bf16 %v331_v7, %v330_v5 }
 0x118   :  { %526 = vst [vmem:[%s812_s3 + $0x10] sm:$0xff] %v498_v8  }
 0x119   :  { %530 = vst [vmem:[%s812_s3 + $0x30] sm:$0xff] %v518_v9  }

// kernel: effinet_forward.11
= control target key start
LH: loop header
LB: loop body
LE: loop exit
PB: predicated region body
PF: predicated region fallthrough
CT: control target
= control target key end

     0   :  { %v193_v0 = vmov 0.0   ;;  %vm194_vm0 = vmmov 0   ;;  %s248_s1 = inlined_call_operand.vmem [shape: bf16[128,128], index: 1, kind: input, shape index: {}]   ;;  %s249_s0 = inlined_call_operand.vmem [shape: bf16[2,128], index: 0, kind: input, shape index: {}]   ;;  %s250_s2 = inlined_call_operand.vmem [shape: f32[1,128], index: 2, kind: input, shape index: {}]   ;;  %s251_s3 = inlined_call_operand.vmem [shape: bf16[2,128], index: 3, kind: output, shape index: {}]  }
   0x1   :  { %159 = vmatprep.subr.bf16.mxu0 %v193_v0  ;;  %v181_v1 = vld [vmem:[%s248_s1] sm:$0xff]   ;;  %175 = vmatprep.mubr.msk.bf16.mxu0 %vm194_vm0, %v193_v0  ;;  %v182_v2 = vld [vmem:[%s248_s1 + $0x8] sm:$0xff]   ;;  %v183_v3 = vld [vmem:[%s248_s1 + $0x10] sm:$0xff]  }
   0x2   :  { %160 = vmatpush3.bf16.msra.mxu0 %v181_v1  ;;  %v184_v4 = vld [vmem:[%s248_s1 + $0x18] sm:$0xff]   ;;  %v185_v5 = vld [vmem:[%s248_s1 + $0x20] sm:$0xff]   ;;  %v186_v6 = vld [vmem:[%s248_s1 + $0x28] sm:$0xff]  }
   0x3   :  { %161 = vmatprep.subr.bf16.mxu0 %v193_v0  ;;  %v187_v7 = vld [vmem:[%s248_s1 + $0x30] sm:$0xff]   ;;  %v188_v8 = vld [vmem:[%s248_s1 + $0x38] sm:$0xff]   ;;  %v15_v9 = vld [vmem:[%s249_s0] sm:$0x1] }
   0x4   :  { %v140_v10 = vld [vmem:[%s250_s2] ss:$0 sm:$0xff] }
   0x6   :  { %162 = vmatpush3.bf16.msra.mxu0 %v182_v2 }
   0x7   :  { %163 = vmatprep.subr.bf16.mxu0 %v193_v0 }
   0xa   :  { %164 = vmatpush3.bf16.msra.mxu0 %v183_v3 }
   0xb   :  { %165 = vmatprep.subr.bf16.mxu0 %v193_v0 }
   0xe   :  { %166 = vmatpush3.bf16.msra.mxu0 %v184_v4 }
   0xf   :  { %167 = vmatprep.subr.bf16.mxu0 %v193_v0 }
  0x12   :  { %168 = vmatpush3.bf16.msra.mxu0 %v185_v5 }
  0x13   :  { %169 = vmatprep.subr.bf16.mxu0 %v193_v0 }
  0x16   :  { %170 = vmatpush3.bf16.msra.mxu0 %v186_v6 }
  0x17   :  { %171 = vmatprep.subr.bf16.mxu0 %v193_v0 }
  0x1a   :  { %172 = vmatpush3.bf16.msra.mxu0 %v187_v7 }
  0x1b   :  { %173 = vmatprep.subr.bf16.mxu0 %v193_v0 }
  0x1e   :  { %174 = vmatpush3.bf16.msra.mxu0 %v188_v8 }
  0x21   :  { %176 = vmatmul.mubr.bf16.vlgmr.msra.gmra.mrb[0].mxu0 %v15_v9 }
  0xf4   :  { %v121_v11 = vpop.f32.mrb[0].mxu0 }
  0xf5   :  { %v122_v12 = vadd.f32 %v140_v10, %v121_v11  ;;  %v177_v13 = vpop.f32.mrb[1].mxu0 }
  0xf6   :  { %v124_v14 = vpop.f32.mrb[2].mxu0 }
  0xf7   :  { %v149_v15 = vmul.f32 -1.442695, %v122_v12  ;;  %v178_v16 = vpop.f32.mrb[3].mxu0 }
  0xf9   :  { %189 = vpow2.f32 %v149_v15 }
 0x103   :  { %v190_v17 = vpop.eup %189 }
 0x104   :  { %v130_v18 = vadd.f32 1.0, %v190_v17 }
 0x106   :  { %191 = vrcp.f32 %v130_v18 }
 0x110   :  { %v192_v19 = vpop.eup %191 }
 0x111   :  { %v133_v20 = vmul.f32 %v192_v19, %v122_v12 }
 0x113   :  { %v134_v21 = vpack.c.bf16 %v133_v20, %v133_v20 }
 0x115   :  { %135 = vst [vmem:[%s251_s3] sm:$0x1] %v134_v21 }

// kernel: effinet_forward.12
= control target key start
LH: loop header
LB: loop body
LE: loop exit
PB: predicated region body
PF: predicated region fallthrough
CT: control target
= control target key end

     0   :  { %v191_v0 = vmov 0.0   ;;  %vm192_vm0 = vmmov 0   ;;  %s246_s1 = inlined_call_operand.vmem [shape: bf16[128,128], index: 1, kind: input, shape index: {}]   ;;  %s247_s0 = inlined_call_operand.vmem [shape: bf16[2,128], index: 0, kind: input, shape index: {}]   ;;  %s248_s2 = inlined_call_operand.vmem [shape: f32[1,128], index: 2, kind: input, shape index: {}]   ;;  %s249_s3 = inlined_call_operand.vmem [shape: f32[2,128], index: 3, kind: output, shape index: {}]  }
   0x1   :  { %157 = vmatprep.subr.bf16.mxu0 %v191_v0  ;;  %v179_v1 = vld [vmem:[%s246_s1] sm:$0xff]   ;;  %173 = vmatprep.mubr.msk.bf16.mxu0 %vm192_vm0, %v191_v0  ;;  %v180_v2 = vld [vmem:[%s246_s1 + $0x8] sm:$0xff]   ;;  %v181_v3 = vld [vmem:[%s246_s1 + $0x10] sm:$0xff]  }
   0x2   :  { %158 = vmatpush3.bf16.msra.mxu0 %v179_v1  ;;  %v182_v4 = vld [vmem:[%s246_s1 + $0x18] sm:$0xff]   ;;  %v183_v5 = vld [vmem:[%s246_s1 + $0x20] sm:$0xff]   ;;  %v184_v6 = vld [vmem:[%s246_s1 + $0x28] sm:$0xff]  }
   0x3   :  { %159 = vmatprep.subr.bf16.mxu0 %v191_v0  ;;  %v185_v7 = vld [vmem:[%s246_s1 + $0x30] sm:$0xff]   ;;  %v186_v8 = vld [vmem:[%s246_s1 + $0x38] sm:$0xff]   ;;  %v15_v9 = vld [vmem:[%s247_s0] sm:$0x1] }
   0x4   :  { %v138_v10 = vld [vmem:[%s248_s2] ss:$0 sm:$0xff] }
   0x6   :  { %160 = vmatpush3.bf16.msra.mxu0 %v180_v2 }
   0x7   :  { %161 = vmatprep.subr.bf16.mxu0 %v191_v0 }
   0xa   :  { %162 = vmatpush3.bf16.msra.mxu0 %v181_v3 }
   0xb   :  { %163 = vmatprep.subr.bf16.mxu0 %v191_v0 }
   0xe   :  { %164 = vmatpush3.bf16.msra.mxu0 %v182_v4 }
   0xf   :  { %165 = vmatprep.subr.bf16.mxu0 %v191_v0 }
  0x12   :  { %166 = vmatpush3.bf16.msra.mxu0 %v183_v5 }
  0x13   :  { %167 = vmatprep.subr.bf16.mxu0 %v191_v0 }
  0x16   :  { %168 = vmatpush3.bf16.msra.mxu0 %v184_v6 }
  0x17   :  { %169 = vmatprep.subr.bf16.mxu0 %v191_v0 }
  0x1a   :  { %170 = vmatpush3.bf16.msra.mxu0 %v185_v7 }
  0x1b   :  { %171 = vmatprep.subr.bf16.mxu0 %v191_v0 }
  0x1e   :  { %172 = vmatpush3.bf16.msra.mxu0 %v186_v8 }
  0x21   :  { %174 = vmatmul.mubr.bf16.vlgmr.msra.gmra.mrb[0].mxu0 %v15_v9 }
  0xf4   :  { %v121_v11 = vpop.f32.mrb[0].mxu0 }
  0xf5   :  { %v122_v12 = vadd.f32 %v138_v10, %v121_v11  ;;  %v175_v13 = vpop.f32.mrb[1].mxu0 }
  0xf6   :  { %v124_v14 = vpop.f32.mrb[2].mxu0 }
  0xf7   :  { %v147_v15 = vmul.f32 -1.442695, %v122_v12  ;;  %v176_v16 = vpop.f32.mrb[3].mxu0 }
  0xf9   :  { %187 = vpow2.f32 %v147_v15 }
 0x103   :  { %v188_v17 = vpop.eup %187 }
 0x104   :  { %v130_v18 = vadd.f32 1.0, %v188_v17 }
 0x106   :  { %189 = vrcp.f32 %v130_v18 }
 0x110   :  { %v190_v19 = vpop.eup %189 }
 0x111   :  { %133 = vst [vmem:[%s249_s3] sm:$0x3] %v190_v19 }

// kernel: effinet_forward.13
= control target key start
LH: loop header
LB: loop body
LE: loop exit
PB: predicated region body
PF: predicated region fallthrough
CT: control target
= control target key end

     0   :  { %s905_s18 = smov 0   ;;  %s907_s19 = smov 0   ;;  %s982_s0 = inlined_call_operand.vmem [shape: bf16[2,64,128], index: 0, kind: input, shape index: {}]   ;;  %s983_s1 = inlined_call_operand.vmem [shape: f32[2,1,128], index: 1, kind: input, shape index: {}]   ;;  %s984_s2 = inlined_call_operand.vmem [shape: bf16[128,128], index: 2, kind: input, shape index: {}]   ;;  %s985_s3 = inlined_call_operand.vmem [shape: f32[1,128], index: 3, kind: input, shape index: {}]   ;;  %s986_s4 = inlined_call_operand.vmem [shape: bf16[2,64,128], index: 4, kind: input, shape index: {}]   ;;  %s987_s5 = inlined_call_operand.vmem [shape: bf16[2,64,128], index: 5, kind: output, shape index: {}]  }
   0x1   :  { %s909_s20 = smov 0  }
   0x2 LB: > { %s27_s21 = sadd.s32 1, %s869_s19  ;;  %p668_p0 = scmp.ge.s32.totalorder %s873_s20, 1  ;;  %s873_s20 = sphi %s909_s20, %s15_s20   ;;  %s869_s19 = sphi %s907_s19, %s989_s19   ;;  %s865_s18 = sphi %s905_s18, %s988_s18  }
   0x3   : > { %p29_p1 = scmp.ge.s32.totalorder %s27_s21, 2  ;;  %p233_p2 = scmp.lt.s32.totalorder %s873_s20, 3 }
   0x5   : > { %s991_s21 = smov (%p29_p1, %s27_s21), 0  ;;  %p234_p3 = pnand %p668_p0, %p233_p2 }
   0x6   : > { %v843_v0 = vld [vmem:[%s984_s2] sm:$0xff] (!%p234_p3)   ;;  %p282_p4 = scmp.lt.s32.totalorder (!%p234_p3), %s865_s18, 1  ;;  %v844_v1 = vld [vmem:[%s984_s2 + $0x8] sm:$0xff] (!%p234_p3)   ;;  %v845_v2 = vld [vmem:[%s984_s2 + $0x10] sm:$0xff] (!%p234_p3)  }
   0x7   : > { %237 = sbr.rel (%p234_p3) target bundleno = 262 (0x106), region = 40  ;;  %779 = vmatprep.subr.bf16.mxu0 (!%p234_p3), %v843_v0  ;;  %803 = vmatprep.subr.bf16.mxu1 (!%p234_p3), %v843_v0  ;;  %v846_v3 = vld [vmem:[%s984_s2 + $0x18] sm:$0xff] (!%p234_p3)   ;;  %v847_v14 = vld [vmem:[%s984_s2 + $0x20] sm:$0xff] (!%p234_p3)   ;;  %v848_v18 = vld [vmem:[%s984_s2 + $0x28] sm:$0xff] (!%p234_p3)  }
   0x8   : > { %780 = vmatpush3.bf16.msra.mxu0 (!%p234_p3), %v843_v0  ;;  %811 = vmatpush3.bf16.msra.mxu1 (!%p234_p3), %v843_v0  ;;  %v849_v21 = vld [vmem:[%s984_s2 + $0x30] sm:$0xff] (!%p234_p3)   ;;  %v850_v26 = vld [vmem:[%s984_s2 + $0x38] sm:$0xff] (!%p234_p3)   ;;  %v676_v37 = vld [vmem:[%s985_s3] ss:$0 sm:$0xff] (!%p234_p3) }
   0x9   : > { %781 = vmatprep.subr.bf16.mxu0 (!%p234_p3), %v844_v1  ;;  %804 = vmatprep.subr.bf16.mxu1 (!%p234_p3), %v844_v1 }
   0xc   : > { %782 = vmatpush3.bf16.msra.mxu0 (!%p234_p3), %v844_v1  ;;  %812 = vmatpush3.bf16.msra.mxu1 (!%p234_p3), %v844_v1 }
   0xd   : > { %783 = vmatprep.subr.bf16.mxu0 (!%p234_p3), %v845_v2  ;;  %805 = vmatprep.subr.bf16.mxu1 (!%p234_p3), %v845_v2 }
   0xe   : > { %s993_s18 = smov (!%p282_p4, %s865_s18), 1 }
   0xf   : > { %s932_s28 = sshll.u32 %s993_s18, 5  ;;  %s293_s9 = scalar_lea.vmem %s983_s1, %s993_s18 }
  0x10   : > { %s938_s6 = scalar_lea.vmem %s982_s0, %s932_s28  ;;  %v675_v5 = vld [vmem:[%s293_s9] ss:$0 sm:$0xff]  ;;  %784 = vmatpush3.bf16.msra.mxu0 %v845_v2  ;;  %813 = vmatpush3.bf16.msra.mxu1 %v845_v2  ;;  %s302_s25 = scalar_lea.vmem %s986_s4, %s932_s28 }
  0x11   : > { %v707_v4 = vld [vmem:[%s938_s6] sm:$0xff]   ;;  %v759_v6 = vld [vmem:[%s938_s6 + $0x10] sm:$0xff]   ;;  %785 = vmatprep.subr.bf16.mxu0 %v846_v3  ;;  %806 = vmatprep.subr.bf16.mxu1 %v846_v3  ;;  %v758_v19 = vld [vmem:[%s938_s6 + $0x8] sm:$0xff]  }
  0x12   : > { %v708_v7 = vunpack.c.l.bf16 %v707_v4  ;;  %v709_v8 = vunpack.c.h.bf16 %v707_v4  ;;  %v716_v9 = vunpack.c.l.bf16 %v759_v6  ;;  %v717_v10 = vunpack.c.h.bf16 %v759_v6  ;;  %v760_v20 = vld [vmem:[%s938_s6 + $0x18] sm:$0xff]   ;;  %v761_v33 = vld [vmem:[%s302_s25 + $0x8] sm:$0xff]   ;;  %v723_v35 = vld [vmem:[%s302_s25] sm:$0xff]   ;;  %s312_s6 = scalar_lea.vmem %s987_s5, %s932_s28 }
  0x13   : > { %v712_v22 = vunpack.c.l.bf16 %v758_v19  ;;  %v713_v23 = vunpack.c.h.bf16 %v758_v19  ;;  %v720_v24 = vunpack.c.l.bf16 %v760_v20  ;;  %v721_v25 = vunpack.c.h.bf16 %v760_v20  ;;  %v763_v34 = vld [vmem:[%s302_s25 + $0x18] sm:$0xff]   ;;  %v762_v36 = vld [vmem:[%s302_s25 + $0x10] sm:$0xff]  }
  0x14   : > { %v338_v11 = vmul.f32 %v708_v7, %v675_v5  ;;  %v339_v12 = vmul.f32 %v709_v8, %v675_v5  ;;  %v342_v13 = vmul.f32 %v716_v9, %v675_v5  ;;  %v343_v15 = vmul.f32 %v717_v10, %v675_v5  ;;  %786 = vmatpush3.bf16.msra.mxu0 %v846_v3 }
  0x15   : > { %814 = vmatpush3.bf16.msra.mxu1 %v846_v3  ;;  %787 = vmatprep.subr.bf16.mxu0 %v847_v14  ;;  %v340_v27 = vmul.f32 %v712_v22, %v675_v5  ;;  %v341_v28 = vmul.f32 %v713_v23, %v675_v5  ;;  %v344_v29 = vmul.f32 %v720_v24, %v675_v5  ;;  %v728_v39 = vunpack.c.l.bf16 %v761_v33 }
  0x16   : > { %v346_v16 = vpack.c.bf16 %v339_v12, %v338_v11  ;;  %v348_v17 = vpack.c.bf16 %v343_v15, %v342_v13  ;;  %807 = vmatprep.subr.bf16.mxu1 %v847_v14  ;;  %v345_v30 = vmul.f32 %v721_v25, %v675_v5  ;;  %v736_v41 = vunpack.c.l.bf16 %v763_v34 }
  0x17   : > { %v347_v31 = vpack.c.bf16 %v341_v28, %v340_v27  ;;  %v724_v42 = vunpack.c.l.bf16 %v723_v35  ;;  %v732_v43 = vunpack.c.l.bf16 %v762_v36  ;;  %v729_v48 = vunpack.c.h.bf16 %v761_v33 }
  0x18   : > { %795 = vmatprep.mubr.bf16.mxu0 %v346_v16  ;;  %799 = vmatprep.mubr.bf16.mxu1 %v348_v17  ;;  %v349_v32 = vpack.c.bf16 %v345_v30, %v344_v29  ;;  %v737_v49 = vunpack.c.h.bf16 %v763_v34  ;;  %v725_v54 = vunpack.c.h.bf16 %v723_v35  ;;  %v733_v55 = vunpack.c.h.bf16 %v762_v36 }
  0x19   : > { %788 = vmatpush3.bf16.msra.mxu0 %v847_v14  ;;  %815 = vmatpush3.bf16.msra.mxu1 %v847_v14 }
  0x1a   : > { %789 = vmatprep.subr.bf16.mxu0 %v848_v18  ;;  %808 = vmatprep.subr.bf16.mxu1 %v848_v18 }
  0x1d   : > { %790 = vmatpush3.bf16.msra.mxu0 %v848_v18  ;;  %816 = vmatpush3.bf16.msra.mxu1 %v848_v18 }
  0x1e   : > { %791 = vmatprep.subr.bf16.mxu0 %v849_v21  ;;  %809 = vmatprep.subr.bf16.mxu1 %v849_v21 }
  0x21   : > { %792 = vmatpush3.bf16.msra.mxu0 %v849_v21  ;;  %817 = vmatpush3.bf16.msra.mxu1 %v849_v21 }
  0x22   : > { %793 = vmatprep.subr.bf16.mxu0 %v850_v26  ;;  %810 = vmatprep.subr.bf16.mxu1 %v850_v26 }
  0x25   : > { %794 = vmatpush3.bf16.msra.mxu0 %v850_v26  ;;  %818 = vmatpush3.bf16.msra.mxu1 %v850_v26 }
  0x28   : > { %796 = vmatmul.mubr.bf16.vlgmr.msra.gmra.mrb[0].mxu0 %v347_v31  ;;  %800 = vmatmul.mubr.bf16.vlgmr.msra.gmra.mrb[0].mxu1 %v349_v32 }
  0xfb   : > { %v797_v38 = vpop.f32.mrb[0].mxu0  ;;  %v801_v40 = vpop.f32.mrb[0].mxu1 }
  0xfc   : > { %v464_v44 = vadd.f32 %v797_v38, %v676_v37  ;;  %v480_v45 = vadd.f32 %v801_v40, %v676_v37  ;;  %v455_v46 = vpop.f32.mrb[1].mxu0  ;;  %v471_v47 = vpop.f32.mrb[1].mxu1 }
  0xfd   : > { %v456_v50 = vadd.f32 %v676_v37, %v455_v46  ;;  %v472_v51 = vadd.f32 %v676_v37, %v471_v47  ;;  %v798_v52 = vpop.f32.mrb[2].mxu0  ;;  %v802_v53 = vpop.f32.mrb[2].mxu1 }
  0xfe   : > { %v467_v56 = vadd.f32 %v798_v52, %v676_v37  ;;  %v483_v57 = vadd.f32 %v802_v53, %v676_v37  ;;  %v458_v58 = vpop.f32.mrb[3].mxu0  ;;  %v474_v59 = vpop.f32.mrb[3].mxu1  ;;  %v504_v62 = vadd.f32 %v728_v39, %v464_v44  ;;  %v508_v63 = vadd.f32 %v736_v41, %v480_v45 }
  0xff   : > { %v459_v60 = vadd.f32 %v676_v37, %v458_v58  ;;  %v475_v61 = vadd.f32 %v676_v37, %v474_v59  ;;  %v502_v2 = vadd.f32 %v724_v42, %v456_v50  ;;  %v506_v3 = vadd.f32 %v732_v43, %v472_v51 }
 0x100   : > { %v505_v0 = vadd.f32 %v729_v48, %v467_v56  ;;  %v509_v1 = vadd.f32 %v737_v49, %v483_v57 }
 0x101   : > { %v503_v4 = vadd.f32 %v725_v54, %v459_v60  ;;  %v507_v5 = vadd.f32 %v733_v55, %v475_v61 }
 0x102   : > { %v746_v6 = vpack.c.bf16 %v505_v0, %v504_v62  ;;  %v756_v7 = vpack.c.bf16 %v509_v1, %v508_v63 }
 0x103   : > { %v741_v8 = vpack.c.bf16 %v503_v4, %v502_v2  ;;  %v751_v9 = vpack.c.bf16 %v507_v5, %v506_v3 }
 0x104   : > { %764 = vst [vmem:[%s312_s6 + $0x8] sm:$0xff] %v746_v6   ;;  %766 = vst [vmem:[%s312_s6 + $0x18] sm:$0xff] %v756_v7  }
 0x105   : > { %742 = vst [vmem:[%s312_s6] sm:$0xff] %v741_v8   ;;  %765 = vst [vmem:[%s312_s6 + $0x10] sm:$0xff] %v751_v9  }
 0x106 PF: > { %s15_s20 = sadd.s32 1, %s873_s20   ;;  %s988_s18 = smov %s869_s19 }
 0x107   : > { %p12_p5 = scmp.ge.s32.totalorder %s15_s20, 4   ;;  %s989_s19 = smov %s991_s21 }
 0x109   :  { %14 = sbr.rel (!%p12_p5) target bundleno = 2 (0x2), region = 76 }

// kernel: effinet_forward.14
= control target key start
LH: loop header
LB: loop body
LE: loop exit
PB: predicated region body
PF: predicated region fallthrough
CT: control target
= control target key end

     0   :  { %s749_s12 = smov 0   ;;  %s751_s13 = smov 0   ;;  %s819_s0 = inlined_call_operand.vmem [shape: bf16[2,64,128], index: 0, kind: input, shape index: {}]   ;;  %s820_s1 = inlined_call_operand.vmem [shape: bf16[128,128], index: 1, kind: input, shape index: {}]   ;;  %s821_s2 = inlined_call_operand.vmem [shape: f32[1,128], index: 2, kind: input, shape index: {}]   ;;  %s822_s3 = inlined_call_operand.vmem [shape: f32[2,1,128], index: 3, kind: output, shape index: {}]  }
   0x1   :  { %s753_s14 = smov 0  }
   0x2 LB: > { %s25_s15 = sadd.s32 1, %s722_s13  ;;  %p556_p0 = scmp.ge.s32.totalorder %s726_s14, 1  ;;  %s726_s14 = sphi %s753_s14, %s13_s14   ;;  %s722_s13 = sphi %s751_s13, %s824_s13   ;;  %s718_s12 = sphi %s749_s12, %s823_s12  }
   0x3   : > { %p27_p1 = scmp.ge.s32.totalorder %s25_s15, 2  ;;  %p156_p2 = scmp.lt.s32.totalorder %s726_s14, 3 }
   0x5   : > { %s826_s15 = smov (%p27_p1, %s25_s15), 0  ;;  %p157_p3 = pnand %p556_p0, %p156_p2 }
   0x6   : > { %v660_v0 = vld [vmem:[%s820_s1] sm:$0xff] (!%p157_p3)   ;;  %p183_p4 = scmp.lt.s32.totalorder (!%p157_p3), %s718_s12, 1  ;;  %v661_v1 = vld [vmem:[%s820_s1 + $0x8] sm:$0xff] (!%p157_p3)   ;;  %v662_v2 = vld [vmem:[%s820_s1 + $0x10] sm:$0xff] (!%p157_p3)   ;;  %v728_v12 = vmov (!%p157_p3), 0.0  }
   0x7   : > { %160 = sbr.rel (%p157_p3) target bundleno = 324 (0x144), region = 32  ;;  %595 = vmatprep.subr.bf16.mxu0 (!%p157_p3), %v660_v0  ;;  %619 = vmatprep.subr.bf16.mxu1 (!%p157_p3), %v660_v0  ;;  %v663_v3 = vld [vmem:[%s820_s1 + $0x18] sm:$0xff] (!%p157_p3)   ;;  %v664_v6 = vld [vmem:[%s820_s1 + $0x20] sm:$0xff] (!%p157_p3)   ;;  %v665_v7 = vld [vmem:[%s820_s1 + $0x28] sm:$0xff] (!%p157_p3)   ;;  %200 = vst [vmem:[#allocation2] sm:$0x1] (!%p157_p3), %v728_v12 }
   0x8   : > { %596 = vmatpush3.bf16.msra.mxu0 (!%p157_p3), %v660_v0  ;;  %627 = vmatpush3.bf16.msra.mxu1 (!%p157_p3), %v660_v0  ;;  %v666_v8 = vld [vmem:[%s820_s1 + $0x30] sm:$0xff] (!%p157_p3)   ;;  %v667_v9 = vld [vmem:[%s820_s1 + $0x38] sm:$0xff] (!%p157_p3)   ;;  %v559_v13 = vld [vmem:[%s821_s2] ss:$0 sm:$0xff] (!%p157_p3) }
   0x9   : > { %597 = vmatprep.subr.bf16.mxu0 (!%p157_p3), %v661_v1  ;;  %620 = vmatprep.subr.bf16.mxu1 (!%p157_p3), %v661_v1 }
   0xc   : > { %598 = vmatpush3.bf16.msra.mxu0 (!%p157_p3), %v661_v1  ;;  %628 = vmatpush3.bf16.msra.mxu1 (!%p157_p3), %v661_v1 }
   0xd   : > { %599 = vmatprep.subr.bf16.mxu0 (!%p157_p3), %v662_v2  ;;  %621 = vmatprep.subr.bf16.mxu1 (!%p157_p3), %v662_v2 }
   0xe   : > { %s828_s12 = smov (!%p183_p4, %s718_s12), 1 }
   0xf   : > { %s582_s22 = sshll.u32 %s828_s12, 5  ;;  %s194_s17 = scalar_lea.vmem %s822_s3, %s828_s12 }
  0x10   : > { %s782_s25 = scalar_lea.vmem %s819_s0, %s582_s22  ;;  %600 = vmatpush3.bf16.msra.mxu0 %v662_v2  ;;  %629 = vmatpush3.bf16.msra.mxu1 %v662_v2 }
  0x11   : > { %v668_v4 = vld [vmem:[%s782_s25] sm:$0xff]   ;;  %v669_v5 = vld [vmem:[%s782_s25 + $0x10] sm:$0xff]   ;;  %601 = vmatprep.subr.bf16.mxu0 %v663_v3  ;;  %622 = vmatprep.subr.bf16.mxu1 %v663_v3  ;;  %v670_v10 = vld [vmem:[%s782_s25 + $0x8] sm:$0xff]  }
  0x12   : > { %611 = vmatprep.mubr.bf16.mxu0 %v668_v4  ;;  %615 = vmatprep.mubr.bf16.mxu1 %v669_v5  ;;  %v671_v11 = vld [vmem:[%s782_s25 + $0x18] sm:$0xff]  }
  0x14   : > { %602 = vmatpush3.bf16.msra.mxu0 %v663_v3  ;;  %630 = vmatpush3.bf16.msra.mxu1 %v663_v3 }
  0x15   : > { %603 = vmatprep.subr.bf16.mxu0 %v664_v6  ;;  %623 = vmatprep.subr.bf16.mxu1 %v664_v6 }
  0x18   : > { %604 = vmatpush3.bf16.msra.mxu0 %v664_v6  ;;  %631 = vmatpush3.bf16.msra.mxu1 %v664_v6 }
  0x19   : > { %605 = vmatprep.subr.bf16.mxu0 %v665_v7  ;;  %624 = vmatprep.subr.bf16.mxu1 %v665_v7 }
  0x1c   : > { %606 = vmatpush3.bf16.msra.mxu0 %v665_v7  ;;  %632 = vmatpush3.bf16.msra.mxu1 %v665_v7 }
  0x1d   : > { %607 = vmatprep.subr.bf16.mxu0 %v666_v8  ;;  %625 = vmatprep.subr.bf16.mxu1 %v666_v8 }
  0x20   : > { %608 = vmatpush3.bf16.msra.mxu0 %v666_v8  ;;  %633 = vmatpush3.bf16.msra.mxu1 %v666_v8 }
  0x21   : > { %609 = vmatprep.subr.bf16.mxu0 %v667_v9  ;;  %626 = vmatprep.subr.bf16.mxu1 %v667_v9 }
  0x24   : > { %610 = vmatpush3.bf16.msra.mxu0 %v667_v9  ;;  %634 = vmatpush3.bf16.msra.mxu1 %v667_v9 }
  0x27   : > { %612 = vmatmul.mubr.bf16.vlgmr.msra.gmra.mrb[0].mxu0 %v670_v10  ;;  %616 = vmatmul.mubr.bf16.vlgmr.msra.gmra.mrb[0].mxu1 %v671_v11 }
  0xfa   : > { %v613_v14 = vpop.f32.mrb[0].mxu0  ;;  %v617_v15 = vpop.f32.mrb[0].mxu1 }
  0xfb   : > { %v347_v16 = vadd.f32 %v613_v14, %v559_v13  ;;  %v338_v17 = vpop.f32.mrb[1].mxu0  ;;  %v354_v18 = vpop.f32.mrb[1].mxu1  ;;  %v363_v32 = vadd.f32 %v617_v15, %v559_v13 }
  0xfc   : > { %v339_v19 = vadd.f32 %v559_v13, %v338_v17  ;;  %v355_v20 = vadd.f32 %v559_v13, %v354_v18  ;;  %v614_v21 = vpop.f32.mrb[2].mxu0  ;;  %v618_v22 = vpop.f32.mrb[2].mxu1  ;;  %v469_v18 = vld [vmem:[#allocation2] sm:$0x1] }
  0xfd   : > { %v574_v23 = vmul.f32 -1.442695, %v347_v16  ;;  %v350_v24 = vadd.f32 %v614_v21, %v559_v13  ;;  %v341_v25 = vpop.f32.mrb[3].mxu0  ;;  %v357_v26 = vpop.f32.mrb[3].mxu1  ;;  %v366_v34 = vadd.f32 %v618_v22, %v559_v13  ;;  %v578_v36 = vmul.f32 -1.442695, %v363_v32 }
  0xfe   : > { %v572_v27 = vmul.f32 -1.442695, %v339_v19  ;;  %v342_v28 = vadd.f32 %v559_v13, %v341_v25  ;;  %v358_v30 = vadd.f32 %v559_v13, %v357_v26  ;;  %v576_v31 = vmul.f32 -1.442695, %v355_v20 }
  0xff   : > { %v575_v29 = vmul.f32 -1.442695, %v350_v24  ;;  %672 = vpow2.f32 %v574_v23  ;;  %v579_v37 = vmul.f32 -1.442695, %v366_v34 }
 0x100   : > { %674 = vpow2.f32 %v572_v27  ;;  %v573_v33 = vmul.f32 -1.442695, %v342_v28  ;;  %v577_v35 = vmul.f32 -1.442695, %v358_v30 }
 0x101   : > { %676 = vpow2.f32 %v575_v29 }
 0x102   : > { %678 = vpow2.f32 %v576_v31 }
 0x103   : > { %680 = vpow2.f32 %v573_v33 }
 0x104   : > { %682 = vpow2.f32 %v577_v35 }
 0x105   : > { %684 = vpow2.f32 %v578_v36 }
 0x106   : > { %686 = vpow2.f32 %v579_v37 }
 0x109   : > { %v673_v38 = vpop.eup %672 }
 0x10a   : > { %v675_v39 = vpop.eup %674  ;;  %v395_v42 = vadd.f32 1.0, %v673_v38 }
 0x10b   : > { %v393_v40 = vadd.f32 1.0, %v675_v39  ;;  %v677_v41 = vpop.eup %676 }
 0x10c   : > { %v679_v43 = vpop.eup %678  ;;  %v396_v45 = vadd.f32 1.0, %v677_v41 }
 0x10d   : > { %v681_v44 = vpop.eup %680  ;;  %688 = vrcp.f32 %v393_v40  ;;  %v397_v48 = vadd.f32 1.0, %v679_v43 }
 0x10e   : > { %v394_v46 = vadd.f32 1.0, %v681_v44  ;;  %v683_v47 = vpop.eup %682  ;;  %690 = vrcp.f32 %v395_v42 }
 0x10f   : > { %v685_v49 = vpop.eup %684  ;;  %v398_v50 = vadd.f32 1.0, %v683_v47 }
 0x110   : > { %692 = vrcp.f32 %v394_v46  ;;  %v687_v51 = vpop.eup %686  ;;  %v399_v52 = vadd.f32 1.0, %v685_v49 }
 0x111   : > { %694 = vrcp.f32 %v396_v45  ;;  %v400_v53 = vadd.f32 1.0, %v687_v51 }
 0x112   : > { %696 = vrcp.f32 %v397_v48 }
 0x113   : > { %698 = vrcp.f32 %v398_v50 }
 0x114   : > { %700 = vrcp.f32 %v399_v52 }
 0x115   : > { %702 = vrcp.f32 %v400_v53 }
 0x117   : > { %v689_v54 = vpop.eup %688 }
 0x118   : > { %v691_v55 = vpop.eup %690  ;;  %v417_v57 = vmul.f32 %v689_v54, %v339_v19 }
 0x119   : > { %v419_v60 = vmul.f32 %v691_v55, %v347_v16 }
 0x11a   : > { %v693_v56 = vpop.eup %692 }
 0x11b   : > { %v418_v58 = vmul.f32 %v693_v56, %v342_v28  ;;  %v695_v59 = vpop.eup %694 }
 0x11c   : > { %v697_v62 = vpop.eup %696  ;;  %v420_v63 = vmul.f32 %v695_v59, %v350_v24 }
 0x11d   : > { %v470_v61 = vadd.f32 %v418_v58, %v417_v57  ;;  %v699_v1 = vpop.eup %698  ;;  %v421_v2 = vmul.f32 %v697_v62, %v355_v20 }
 0x11e   : > { %v701_v4 = vpop.eup %700  ;;  %v422_v5 = vmul.f32 %v699_v1, %v358_v30 }
 0x11f   : > { %v471_v0 = vadd.f32 %v470_v61, %v419_v60  ;;  %v703_v7 = vpop.eup %702  ;;  %v423_v8 = vmul.f32 %v701_v4, %v363_v32 }
 0x120   : > { %v424_v10 = vmul.f32 %v703_v7, %v366_v34 }
 0x121   : > { %v472_v3 = vadd.f32 %v471_v0, %v420_v63 }
 0x123   : > { %v473_v6 = vadd.f32 %v472_v3, %v421_v2 }
 0x125   : > { %v474_v9 = vadd.f32 %v473_v6, %v422_v5 }
 0x127   : > { %v475_v11 = vadd.f32 %v474_v9, %v423_v8 }
 0x129   : > { %v476_v12 = vadd.f32 %v475_v11, %v424_v10 }
 0x12b   : > { %v477_v13 = vrot.slane %v476_v12, 4 }
 0x12d   : > { %v478_v14 = vadd.f32 %v477_v13, %v476_v12 }
 0x12f   : > { %v479_v15 = vrot.slane %v478_v14, 2 }
 0x131   : > { %v480_v16 = vadd.f32 %v479_v15, %v478_v14 }
 0x133   : > { %v481_v17 = vrot.slane %v480_v16, 1 }
 0x135   : > { %v482_v19 = vadd.f32 %v481_v17, %v480_v16 }
 0x137   : > { %v483_v21 = vadd.f32 %v482_v19, %v469_v18 }
 0x139   : > { %484 = vst [vmem:[#allocation2] sm:$0x1] %v483_v21 }
 0x140   : > { %v488_v20 = vld [vmem:[#allocation2] sm:$0x1] }
 0x141   : > { %v489_v22 = vmul.f32 0.015625, %v488_v20 }
 0x143   : > { %490 = vst [vmem:[%s194_s17] sm:$0x1] %v489_v22 }
 0x144 PF: > { %s13_s14 = sadd.s32 1, %s726_s14   ;;  %s823_s12 = smov %s722_s13 }
 0x145   : > { %p10_p5 = scmp.ge.s32.totalorder %s13_s14, 4   ;;  %s824_s13 = smov %s826_s15 }
 0x147   :  { %12 = sbr.rel (!%p10_p5) target bundleno = 2 (0x2), region = 70 }

// kernel: effinet_forward.15
= control target key start
LH: loop header
LB: loop body
LE: loop exit
PB: predicated region body
PF: predicated region fallthrough
CT: control target
= control target key end

     0   :  { %v196_v0 = vmov 0.0|0.0   ;;  %vm197_vm0 = vmmov 0   ;;  %v198_v4 = vmov 0.0   ;;  %vm110_vm1 = vcmask 1024   ;;  %s276_s1 = inlined_call_operand.vmem [shape: f32[128,1], index: 1, kind: input, shape index: {}]   ;;  %s277_s2 = inlined_call_operand.<no memory space> [shape: f32[1,1], index: 2, kind: input, shape index: {}]   ;;  %s278_s0 = inlined_call_operand.vmem [shape: f32[2,128], index: 0, kind: input, shape index: {}]   ;;  %s279_s3 = inlined_call_operand.vmem [shape: f32[2,1], index: 3, kind: output, shape index: {}]  }
   0x1   :  { %169 = vmatprep.subr.bf16.mxu0 %v196_v0  ;;  %v17_v1 = vld [vmem:[%s276_s1] sm:$0xff]  ;;  %v18_v2 = vld [vmem:[%s276_s1 + $0x8] sm:$0xff]  ;;  %v19_v3 = vld [vmem:[%s276_s1 + $0x10] sm:$0xff]  ;;  %166 = vmatprep.mubr.msk.f32.mxu0 %vm197_vm0, %v198_v4  ;;  %v8_v5 = vstv %s277_s2 }
   0x2   :  { %v170_v6 = vpack.c.bf16 %v18_v2, %v17_v1  ;;  %v20_v7 = vld [vmem:[%s276_s1 + $0x18] sm:$0xff]  ;;  %9 = vst [vmem:[#allocation2] sm:$0x1] %v8_v5  ;;  %v21_v9 = vld [vmem:[%s276_s1 + $0x20] sm:$0xff]  ;;  %v22_v10 = vld [vmem:[%s276_s1 + $0x28] sm:$0xff] }
   0x3   :  { %v173_v8 = vpack.c.bf16 %v20_v7, %v19_v3  ;;  %v176_v11 = vpack.c.bf16 %v22_v10, %v21_v9  ;;  %v23_v12 = vld [vmem:[%s276_s1 + $0x30] sm:$0xff]  ;;  %v24_v13 = vld [vmem:[%s276_s1 + $0x38] sm:$0xff]  ;;  %v25_v15 = vld [vmem:[%s276_s1 + $0x40] sm:$0xff] }
   0x4   :  { %171 = vmatpush3.bf16.msra.mxu0 %v170_v6  ;;  %v179_v14 = vpack.c.bf16 %v24_v13, %v23_v12  ;;  %v26_v16 = vld [vmem:[%s276_s1 + $0x48] sm:$0xff]  ;;  %v27_v18 = vld [vmem:[%s276_s1 + $0x50] sm:$0xff]  ;;  %v28_v19 = vld [vmem:[%s276_s1 + $0x58] sm:$0xff] }
   0x5   :  { %172 = vmatprep.subr.bf16.mxu0 %v196_v0  ;;  %v182_v17 = vpack.c.bf16 %v26_v16, %v25_v15  ;;  %v185_v20 = vpack.c.bf16 %v28_v19, %v27_v18  ;;  %v29_v21 = vld [vmem:[%s276_s1 + $0x60] sm:$0xff]  ;;  %v30_v22 = vld [vmem:[%s276_s1 + $0x68] sm:$0xff]  ;;  %v31_v24 = vld [vmem:[%s276_s1 + $0x70] sm:$0xff] }
   0x6   :  { %v188_v23 = vpack.c.bf16 %v30_v22, %v29_v21  ;;  %v32_v25 = vld [vmem:[%s276_s1 + $0x78] sm:$0xff]  ;;  %v16_v27 = vld [vmem:[%s278_s0] sm:$0x3] }
   0x7   :  { %v191_v26 = vpack.c.bf16 %v32_v25, %v31_v24 }
   0x8   :  { %174 = vmatpush3.bf16.msra.mxu0 %v173_v8 }
   0x9   :  { %175 = vmatprep.subr.bf16.mxu0 %v196_v0  ;;  %v116_v28 = vld [vmem:[#allocation2] ss:$0 sm:$0xff] }
   0xc   :  { %177 = vmatpush3.bf16.msra.mxu0 %v176_v11 }
   0xd   :  { %178 = vmatprep.subr.bf16.mxu0 %v196_v0 }
  0x10   :  { %180 = vmatpush3.bf16.msra.mxu0 %v179_v14 }
  0x11   :  { %181 = vmatprep.subr.bf16.mxu0 %v196_v0 }
  0x14   :  { %183 = vmatpush3.bf16.msra.mxu0 %v182_v17 }
  0x15   :  { %184 = vmatprep.subr.bf16.mxu0 %v196_v0 }
  0x18   :  { %186 = vmatpush3.bf16.msra.mxu0 %v185_v20 }
  0x19   :  { %187 = vmatprep.subr.bf16.mxu0 %v196_v0 }
  0x1c   :  { %189 = vmatpush3.bf16.msra.mxu0 %v188_v23 }
  0x1d   :  { %190 = vmatprep.subr.bf16.mxu0 %v196_v0 }
  0x20   :  { %192 = vmatpush3.bf16.msra.mxu0 %v191_v26 }
  0x23   :  { %167 = vmatmul.mubr.f32.vlgmr.msra.gmra.mrb[0].mxu0 %v16_v27 }
  0xf6   :  { %v106_v29 = vpop.f32.mrb[0].mxu0 }
  0xf7   :  { %v107_v30 = vadd.f32 %v116_v28, %v106_v29  ;;  %v168_v31 = vpop.f32.mrb[1].mxu0 }
  0xf9   :  { %111 = vst.msk [vmem:[%s279_s3] sm:$0x3] %vm110_vm1, %v107_v30 }

</bundles_post_ra>
